<compile_context>
chip_gen: v7x
topology: tpu7x:2x2x1
jax: 0.10.0
libtpu: 0.0.40
codegen_flags: <defaults>
</compile_context>

<pallas_src>
import functools

import jax
import jax.numpy as jnp
from jax.experimental import pallas as pl
from jax.experimental.pallas import tpu as pltpu

# Original layer widths.
DIMS = [784, 520, 320, 240, 120, 10]


def _round_up(x, m):
    return (x + m - 1) // m * m


# Per-layer padded feature dims: the network *input* (784) stays unpadded —
# it is the K dim of layer 1 only, and Mosaic handles K % 128 != 0 natively —
# every other boundary is padded to a 128-lane multiple.
PAD = [DIMS[0]] + [_round_up(d, 128) for d in DIMS[1:]]   # [784, 640, 384, 256, 128, 128]


def _elementwise_dtype():
    """bf16 bias-add/ReLU on chips with bf16 VPUs (v6e/v7x), f32 otherwise."""
    try:
        kind = jax.devices()[0].device_kind.lower()
    except Exception:
        return jnp.float32
    if "v6" in kind or "v7" in kind:
        return jnp.bfloat16
    return jnp.float32


def mlp_kernel(x_ref,
               w1_ref, b1_ref,
               w2_ref, b2_ref,
               w3_ref, b3_ref,
               w4_ref, b4_ref,
               w5_ref, b5_ref,
               out_ref, *, compute_dtype):
    """Fused 5-layer MLP forward for one batch tile.

    x: (TB, 784) f32 (cast to bf16 here); weights: bf16 (in, out_pad);
    hidden biases: compute_dtype (1, out_pad); final bias: f32.
    MXU accumulates in f32; bias-add/ReLU run in compute_dtype; activations
    are bf16 at every MXU input.
    """
    h = x_ref[...].astype(jnp.bfloat16)
    for w_ref, b_ref in ((w1_ref, b1_ref), (w2_ref, b2_ref),
                         (w3_ref, b3_ref), (w4_ref, b4_ref)):
        a = jnp.dot(h, w_ref[...], preferred_element_type=jnp.float32)
        a = jnp.maximum(a.astype(compute_dtype) + b_ref[...], 0)
        h = a.astype(jnp.bfloat16)
    # Final layer: no ReLU (raw logits, matches the PyTorch forward). Kept f32.
    logits = jnp.dot(h, w5_ref[...], preferred_element_type=jnp.float32)
    out_ref[...] = logits + b5_ref[...]


def init_params(key):
    """Deterministic synthetic init (Kaiming-uniform-ish, like nn.Linear).
    Weights stored pre-transposed as (in, out); biases as (1, out)."""
    params = []
    for fan_in, fan_out in zip(DIMS[:-1], DIMS[1:]):
        key, kw, kb = jax.random.split(key, 3)
        bound = 1.0 / jnp.sqrt(fan_in)
        w = jax.random.uniform(kw, (fan_in, fan_out), jnp.float32, -bound, bound)
        b = jax.random.uniform(kb, (1, fan_out), jnp.float32, -bound, bound)
        params.append((w, b))
    return params


def pad_params(params, elementwise_dtype=jnp.float32):
    """Zero-pad layers to the PAD feature dims.  Weights -> bf16 (f32 MXU
    accumulation is forced in-kernel); hidden biases -> elementwise_dtype;
    final bias stays f32.  Padded rows/cols are zero, so they never leak."""
    padded = []
    n_layers = len(params)
    for idx, ((w, b), in_p, out_p) in enumerate(zip(params, PAD[:-1], PAD[1:])):
        fan_in, fan_out = w.shape
        w_p = jnp.zeros((in_p, out_p), jnp.bfloat16)
        w_p = w_p.at[:fan_in, :fan_out].set(w.astype(jnp.bfloat16))
        b_dtype = jnp.float32 if idx == n_layers - 1 else elementwise_dtype
        b_p = jnp.zeros((1, out_p), b_dtype)
        b_p = b_p.at[:, :fan_out].set(b.astype(b_dtype))
        padded.append((w_p, b_p))
    return padded


def _choose_batch_tiling(B, tb_max):
    """Pick (TB, B_pad, n_tiles) for the batch grid.

    Tile count ~ ceil(B / tb_max); TB = ceil(B / n) rounded up to 16 (8 for
    tiny batches), so padding waste is bounded by 16 rows per tile rather than
    a whole tile.  For B >= 128 we force >= 2 tiles so the "parallel" batch
    axis shards across both TensorCores on v7x.
    """
    n = max(1, pl.cdiv(B, tb_max))
    if n < 2 and B >= 128:
        n = 2
    align = 16 if B >= 16 else 8
    tb = _round_up(pl.cdiv(B, n), align)
    return tb, n * tb, n


def net_forward(x_nchw, padded_params, *, tb_max=1024):
    """x_nchw: (B, 1, 28, 28) float32.  padded_params: output of pad_params.
    Returns (B, 10) float32 logits."""
    B = x_nchw.shape[0]
    x = x_nchw.reshape(B, DIMS[0])            # torch: x.view(-1, 784); free reshape, stays f32

    compute_dtype = padded_params[0][1].dtype  # hidden-bias dtype == elementwise dtype

    TB, B_pad, _ = _choose_batch_tiling(B, tb_max)
    if B_pad != B:
        x = jnp.pad(x, ((0, B_pad - B), (0, 0)))  # only when the grid doesn't divide B

    flat = []
    for w, b in padded_params:
        flat += [w, b]

    # Weights/biases: constant block index -> stay VMEM-resident across tiles.
    # (Default double-buffering of the ~1.9 MiB weight set is accepted; total
    # footprint stays well under the 32 MiB budget even at TB=1024.)
    resident = lambda a: pl.BlockSpec(a.shape, lambda i: (0, 0))

    out = pl.pallas_call(
        functools.partial(mlp_kernel, compute_dtype=compute_dtype),
        out_shape=jax.ShapeDtypeStruct((B_pad, PAD[-1]), jnp.float32),
        grid=(B_pad // TB,),
        in_specs=[pl.BlockSpec((TB, DIMS[0]), lambda i: (i, 0))]
                + [resident(a) for a in flat],
        out_specs=pl.BlockSpec((TB, PAD[-1]), lambda i: (i, 0)),
        compiler_params=pltpu.CompilerParams(
            dimension_semantics=("parallel",),
            vmem_limit_bytes=32 << 20,
        ),
    )(x, *flat)

    return out[:B, :DIMS[-1]]


def forward_reference(x_nchw, padded_params, compute_dtype):
    """Plain-JAX reference mirroring the kernel's dtype path exactly."""
    B = x_nchw.shape[0]
    h = x_nchw.reshape(B, DIMS[0]).astype(jnp.bfloat16)
    for w_p, b_p in padded_params[:-1]:
        a = jnp.dot(h, w_p, preferred_element_type=jnp.float32)
        a = jnp.maximum(a.astype(compute_dtype) + b_p, 0)
        h = a.astype(jnp.bfloat16)
    w_p, b_p = padded_params[-1]
    return (jnp.dot(h, w_p, preferred_element_type=jnp.float32) + b_p)[:, :DIMS[-1]]


if __name__ == "__main__":
    key = jax.random.PRNGKey(0)
    key, kx = jax.random.split(key)

    B = 8
    x = jax.random.normal(kx, (B, 1, 28, 28), jnp.float32)  # NCHW, MNIST-shaped

    params = init_params(key)
    compute_dtype = _elementwise_dtype()
    padded = pad_params(params, compute_dtype)

    out = jax.block_until_ready(net_forward(x, padded))

    ref = forward_reference(x, padded, compute_dtype)

    assert out.shape == (B, 10)
    assert jnp.allclose(out, ref, atol=1e-2, rtol=1e-2), "mismatch vs reference"

    print("KERNEL_OK")
</pallas_src>

<mosaic_0001>
module attributes {stable_mosaic.version = 11 : i64} {
  func.func @mlp_kernel(%arg0: i32, %arg1: memref<8x784xf32, #tpu.memory_space<vmem>>, %arg2: memref<784x640xbf16, #tpu.memory_space<vmem>>, %arg3: memref<1x640xf32, #tpu.memory_space<vmem>>, %arg4: memref<640x384xbf16, #tpu.memory_space<vmem>>, %arg5: memref<1x384xf32, #tpu.memory_space<vmem>>, %arg6: memref<384x256xbf16, #tpu.memory_space<vmem>>, %arg7: memref<1x256xf32, #tpu.memory_space<vmem>>, %arg8: memref<256x128xbf16, #tpu.memory_space<vmem>>, %arg9: memref<1x128xf32, #tpu.memory_space<vmem>>, %arg10: memref<128x128xbf16, #tpu.memory_space<vmem>>, %arg11: memref<1x128xf32, #tpu.memory_space<vmem>>, %arg12: memref<8x128xf32, #tpu.memory_space<vmem>>) attributes {dimension_semantics = [#tpu.dimension_semantics<parallel>], iteration_bounds = array<i64: 1>, scalar_prefetch = 0 : i64, scratch_operands = 0 : i64, tpu.core_type = #tpu.core_type<tc>, window_params = [{transform_indices = @transform_0, window_bounds = array<i64: 8, 784>}, {pipeline_mode = #tpu.pipeline_mode<synchronous>, transform_indices = @transform_1, window_bounds = array<i64: 784, 640>}, {pipeline_mode = #tpu.pipeline_mode<synchronous>, transform_indices = @transform_2, window_bounds = array<i64: 1, 640>}, {pipeline_mode = #tpu.pipeline_mode<synchronous>, transform_indices = @transform_3, window_bounds = array<i64: 640, 384>}, {pipeline_mode = #tpu.pipeline_mode<synchronous>, transform_indices = @transform_4, window_bounds = array<i64: 1, 384>}, {pipeline_mode = #tpu.pipeline_mode<synchronous>, transform_indices = @transform_5, window_bounds = array<i64: 384, 256>}, {pipeline_mode = #tpu.pipeline_mode<synchronous>, transform_indices = @transform_6, window_bounds = array<i64: 1, 256>}, {pipeline_mode = #tpu.pipeline_mode<synchronous>, transform_indices = @transform_7, window_bounds = array<i64: 256, 128>}, {pipeline_mode = #tpu.pipeline_mode<synchronous>, transform_indices = @transform_8, window_bounds = array<i64: 1, 128>}, {pipeline_mode = #tpu.pipeline_mode<synchronous>, transform_indices = @transform_9, window_bounds = array<i64: 128, 128>}, {pipeline_mode = #tpu.pipeline_mode<synchronous>, transform_indices = @transform_10, window_bounds = array<i64: 1, 128>}, {transform_indices = @transform_11, window_bounds = array<i64: 8, 128>}]} {
    %c0 = arith.constant 0 : index
    %c0_0 = arith.constant 0 : index
    %0 = vector.load %arg1[%c0, %c0_0] : memref<8x784xf32, #tpu.memory_space<vmem>>, vector<8x784xf32>
    %1 = arith.truncf %0 : vector<8x784xf32> to vector<8x784xbf16>
    %c0_1 = arith.constant 0 : index
    %c0_2 = arith.constant 0 : index
    %2 = vector.load %arg2[%c0_1, %c0_2] : memref<784x640xbf16, #tpu.memory_space<vmem>>, vector<784x640xbf16>
    %cst = arith.constant dense<0.000000e+00> : vector<8x640xf32>
    %3 = tpu.matmul %1, %2, %cst {dimension_numbers = #tpu.dot_dimension_numbers<[1], [0], [0], [1], [0, 0, 1, 1], [], []>} : vector<8x784xbf16>, vector<784x640xbf16>, vector<8x640xf32> -> vector<8x640xf32>
    %c0_3 = arith.constant 0 : index
    %c0_4 = arith.constant 0 : index
    %4 = vector.load %arg3[%c0_3, %c0_4] : memref<1x640xf32, #tpu.memory_space<vmem>>, vector<1x640xf32>
    %5 = vector.broadcast %4 : vector<1x640xf32> to vector<8x640xf32>
    %6 = arith.addf %3, %5 : vector<8x640xf32>
    %cst_5 = arith.constant 0.000000e+00 : f32
    %7 = vector.broadcast %cst_5 : f32 to vector<8x640xf32>
    %8 = arith.maximumf %6, %7 : vector<8x640xf32>
    %9 = arith.truncf %8 : vector<8x640xf32> to vector<8x640xbf16>
    %c0_6 = arith.constant 0 : index
    %c0_7 = arith.constant 0 : index
    %10 = vector.load %arg4[%c0_6, %c0_7] : memref<640x384xbf16, #tpu.memory_space<vmem>>, vector<640x384xbf16>
    %cst_8 = arith.constant dense<0.000000e+00> : vector<8x384xf32>
    %11 = tpu.matmul %9, %10, %cst_8 {dimension_numbers = #tpu.dot_dimension_numbers<[1], [0], [0], [1], [0, 0, 1, 1], [], []>} : vector<8x640xbf16>, vector<640x384xbf16>, vector<8x384xf32> -> vector<8x384xf32>
    %c0_9 = arith.constant 0 : index
    %c0_10 = arith.constant 0 : index
    %12 = vector.load %arg5[%c0_9, %c0_10] : memref<1x384xf32, #tpu.memory_space<vmem>>, vector<1x384xf32>
    %13 = vector.broadcast %12 : vector<1x384xf32> to vector<8x384xf32>
    %14 = arith.addf %11, %13 : vector<8x384xf32>
    %cst_11 = arith.constant 0.000000e+00 : f32
    %15 = vector.broadcast %cst_11 : f32 to vector<8x384xf32>
    %16 = arith.maximumf %14, %15 : vector<8x384xf32>
    %17 = arith.truncf %16 : vector<8x384xf32> to vector<8x384xbf16>
    %c0_12 = arith.constant 0 : index
    %c0_13 = arith.constant 0 : index
    %18 = vector.load %arg6[%c0_12, %c0_13] : memref<384x256xbf16, #tpu.memory_space<vmem>>, vector<384x256xbf16>
    %cst_14 = arith.constant dense<0.000000e+00> : vector<8x256xf32>
    %19 = tpu.matmul %17, %18, %cst_14 {dimension_numbers = #tpu.dot_dimension_numbers<[1], [0], [0], [1], [0, 0, 1, 1], [], []>} : vector<8x384xbf16>, vector<384x256xbf16>, vector<8x256xf32> -> vector<8x256xf32>
    %c0_15 = arith.constant 0 : index
    %c0_16 = arith.constant 0 : index
    %20 = vector.load %arg7[%c0_15, %c0_16] : memref<1x256xf32, #tpu.memory_space<vmem>>, vector<1x256xf32>
    %21 = vector.broadcast %20 : vector<1x256xf32> to vector<8x256xf32>
    %22 = arith.addf %19, %21 : vector<8x256xf32>
    %cst_17 = arith.constant 0.000000e+00 : f32
    %23 = vector.broadcast %cst_17 : f32 to vector<8x256xf32>
    %24 = arith.maximumf %22, %23 : vector<8x256xf32>
    %25 = arith.truncf %24 : vector<8x256xf32> to vector<8x256xbf16>
    %c0_18 = arith.constant 0 : index
    %c0_19 = arith.constant 0 : index
    %26 = vector.load %arg8[%c0_18, %c0_19] : memref<256x128xbf16, #tpu.memory_space<vmem>>, vector<256x128xbf16>
    %cst_20 = arith.constant dense<0.000000e+00> : vector<8x128xf32>
    %27 = tpu.matmul %25, %26, %cst_20 {dimension_numbers = #tpu.dot_dimension_numbers<[1], [0], [0], [1], [0, 0, 1, 1], [], []>} : vector<8x256xbf16>, vector<256x128xbf16>, vector<8x128xf32> -> vector<8x128xf32>
    %c0_21 = arith.constant 0 : index
    %c0_22 = arith.constant 0 : index
    %28 = vector.load %arg9[%c0_21, %c0_22] : memref<1x128xf32, #tpu.memory_space<vmem>>, vector<1x128xf32>
    %29 = vector.broadcast %28 : vector<1x128xf32> to vector<8x128xf32>
    %30 = arith.addf %27, %29 : vector<8x128xf32>
    %cst_23 = arith.constant 0.000000e+00 : f32
    %31 = vector.broadcast %cst_23 : f32 to vector<8x128xf32>
    %32 = arith.maximumf %30, %31 : vector<8x128xf32>
    %33 = arith.truncf %32 : vector<8x128xf32> to vector<8x128xbf16>
    %c0_24 = arith.constant 0 : index
    %c0_25 = arith.constant 0 : index
    %34 = vector.load %arg10[%c0_24, %c0_25] : memref<128x128xbf16, #tpu.memory_space<vmem>>, vector<128x128xbf16>
    %cst_26 = arith.constant dense<0.000000e+00> : vector<8x128xf32>
    %35 = tpu.matmul %33, %34, %cst_26 {dimension_numbers = #tpu.dot_dimension_numbers<[1], [0], [0], [1], [0, 0, 1, 1], [], []>} : vector<8x128xbf16>, vector<128x128xbf16>, vector<8x128xf32> -> vector<8x128xf32>
    %c0_27 = arith.constant 0 : index
    %c0_28 = arith.constant 0 : index
    %36 = vector.load %arg11[%c0_27, %c0_28] : memref<1x128xf32, #tpu.memory_space<vmem>>, vector<1x128xf32>
    %37 = vector.broadcast %36 : vector<1x128xf32> to vector<8x128xf32>
    %38 = arith.addf %35, %37 : vector<8x128xf32>
    %c0_29 = arith.constant 0 : index
    %c0_30 = arith.constant 0 : index
    %39 = vector.load %arg12[%c0_29, %c0_30] : memref<8x128xf32, #tpu.memory_space<vmem>>, vector<8x128xf32>
    tpu.vector_store %arg12[%c0_29, %c0_30], %38 {strides = array<i32>} : memref<8x128xf32, #tpu.memory_space<vmem>>, vector<8x128xf32>,
    return
  }
  func.func @transform_0(%arg0: i32) -> (i32, i32) {
    %c0_i32 = arith.constant 0 : i32
    %c0_i32_0 = arith.constant 0 : i32
    return %arg0, %c0_i32 : i32, i32
  }
  func.func @transform_1(%arg0: i32) -> (i32, i32) {
    %c0_i32 = arith.constant 0 : i32
    %c0_i32_0 = arith.constant 0 : i32
    %c0_i32_1 = arith.constant 0 : i32
    return %c0_i32, %c0_i32_0 : i32, i32
  }
  func.func @transform_2(%arg0: i32) -> (i32, i32) {
    %c0_i32 = arith.constant 0 : i32
    %c0_i32_0 = arith.constant 0 : i32
    %c0_i32_1 = arith.constant 0 : i32
    return %c0_i32, %c0_i32_0 : i32, i32
  }
  func.func @transform_3(%arg0: i32) -> (i32, i32) {
    %c0_i32 = arith.constant 0 : i32
    %c0_i32_0 = arith.constant 0 : i32
    %c0_i32_1 = arith.constant 0 : i32
    return %c0_i32, %c0_i32_0 : i32, i32
  }
  func.func @transform_4(%arg0: i32) -> (i32, i32) {
    %c0_i32 = arith.constant 0 : i32
    %c0_i32_0 = arith.constant 0 : i32
    %c0_i32_1 = arith.constant 0 : i32
    return %c0_i32, %c0_i32_0 : i32, i32
  }
  func.func @transform_5(%arg0: i32) -> (i32, i32) {
    %c0_i32 = arith.constant 0 : i32
    %c0_i32_0 = arith.constant 0 : i32
    %c0_i32_1 = arith.constant 0 : i32
    return %c0_i32, %c0_i32_0 : i32, i32
  }
  func.func @transform_6(%arg0: i32) -> (i32, i32) {
    %c0_i32 = arith.constant 0 : i32
    %c0_i32_0 = arith.constant 0 : i32
    %c0_i32_1 = arith.constant 0 : i32
    return %c0_i32, %c0_i32_0 : i32, i32
  }
  func.func @transform_7(%arg0: i32) -> (i32, i32) {
    %c0_i32 = arith.constant 0 : i32
    %c0_i32_0 = arith.constant 0 : i32
    %c0_i32_1 = arith.constant 0 : i32
    return %c0_i32, %c0_i32_0 : i32, i32
  }
  func.func @transform_8(%arg0: i32) -> (i32, i32) {
    %c0_i32 = arith.constant 0 : i32
    %c0_i32_0 = arith.constant 0 : i32
    %c0_i32_1 = arith.constant 0 : i32
    return %c0_i32, %c0_i32_0 : i32, i32
  }
  func.func @transform_9(%arg0: i32) -> (i32, i32) {
    %c0_i32 = arith.constant 0 : i32
    %c0_i32_0 = arith.constant 0 : i32
    %c0_i32_1 = arith.constant 0 : i32
    return %c0_i32, %c0_i32_0 : i32, i32
  }
  func.func @transform_10(%arg0: i32) -> (i32, i32) {
    %c0_i32 = arith.constant 0 : i32
    %c0_i32_0 = arith.constant 0 : i32
    %c0_i32_1 = arith.constant 0 : i32
    return %c0_i32, %c0_i32_0 : i32, i32
  }
  func.func @transform_11(%arg0: i32) -> (i32, i32) {
    %c0_i32 = arith.constant 0 : i32
    %c0_i32_0 = arith.constant 0 : i32
    return %arg0, %c0_i32 : i32, i32
  }
}

</mosaic_0001>

<bundles_post_ra>
// kernel: tpu_custom_call.1
= control target key start
LH: loop header
LB: loop body
LE: loop exit
PB: predicated region body
PF: predicated region fallthrough
CT: control target
= control target key end

     0   :  { %16 = vsyncpa [#allocation3], 0  ;;  %s5742_s0 = inlined_call_operand.hbm [shape: f32[8,784], index: 0, kind: input, shape index: {}]   ;;  %s5743_s1 = inlined_call_operand.hbm [shape: bf16[784,640], index: 1, kind: input, shape index: {}]   ;;  %s5744_s2 = inlined_call_operand.vmem [shape: f32[1,640], index: 2, kind: input, shape index: {}]   ;;  %s5745_s3 = inlined_call_operand.hbm [shape: bf16[640,384], index: 3, kind: input, shape index: {}]   ;;  %s5746_s4 = inlined_call_operand.vmem [shape: f32[1,384], index: 4, kind: input, shape index: {}]   ;;  %s5747_s5 = inlined_call_operand.hbm [shape: bf16[384,256], index: 5, kind: input, shape index: {}]   ;;  %s5748_s6 = inlined_call_operand.vmem [shape: f32[1,256], index: 6, kind: input, shape index: {}]   ;;  %s5749_s7 = inlined_call_operand.hbm [shape: bf16[256,128], index: 7, kind: input, shape index: {}]   ;;  %s5750_s8 = inlined_call_operand.vmem [shape: f32[1,128], index: 8, kind: input, shape index: {}]   ;;  %s5751_s9 = inlined_call_operand.hbm [shape: bf16[128,128], index: 9, kind: input, shape index: {}]   ;;  %s5752_s10 = inlined_call_operand.vmem [shape: f32[1,128], index: 10, kind: input, shape index: {}]   ;;  %s5753_s11 = inlined_call_operand.hbm [shape: f32[8,128], index: 11, kind: output, shape index: {}]  }
   0x1   :  { %17 = vsyncpa [#allocation6], 0 }
   0x2   :  { %18 = vsyncpa [#allocation9], 0 }
   0x3   :  { %19 = vsyncpa [#allocation12], 0 }
   0x4   :  { %20 = vsyncpa [#allocation4], 0  ;;  %s5455_s17 = smov [#allocation5]   ;;  %s5291_s21 = scalar_lea.hbm %s5743_s1, 31360 }
   0x5   :  { %s36_s18 = sshll.u32 %s5455_s17, 4  ;;  %p5292_p0 = scmp.ne.s32.totalorder %s5743_s1, %s5291_s21  ;;  %s37_s18 = int_to_ptr.vmem [resolvable:$true] %s36_s18 }
   0x6   :  { %p5295_p1 = scmp.lt.u32.totalorder %s5291_s21, %s5743_s1 }
   0x8   :  { %p5297_p2 = pnand %p5295_p1, %p5292_p0 }
   0xa   :  { %5300 = shalt.err (!%p5297_p2)
}
   0xb   :  { %s5301_s26 = scalar_lea.vmem %s37_s18, 31360  ;;  %p5306_p4 = scmp.lt.s32.totalorder %s37_s18, %s37_s18 }
   0xc   :  { %p5302_p3 = scmp.ne.s32.totalorder %s37_s18, %s5301_s26  ;;  %p5307_p5 = scmp.lt.s32.totalorder %s5301_s26, %s5301_s26 }
   0xe   :  { %p5308_p6 = por %p5307_p5, %p5306_p4 }
  0x10   :  { %p5309_p7 = pnand %p5308_p6, %p5302_p3 }
  0x12   :  { %5312 = shalt.err (!%p5309_p7)
}
  0x13   :  { %s5456_s27 = smov 320   ;;  %s5457_s28 = smov 20  }
  0x14   :  { %42 = dma.hbm_to_vmem [thread:$0]  %s5743_s1, 31360, %s37_s18, [#allocation6], %s5456_s27, %s5456_s27, %s5457_s28  }
  0x15   :  { %s5458_s12 = smov [#allocation8]   ;;  %s5313_s16 = scalar_lea.hbm %s5747_s5, 6144 }
  0x16   :  { %s64_s13 = sshll.u32 %s5458_s12, 4  ;;  %p5314_p8 = scmp.ne.s32.totalorder %s5747_s5, %s5313_s16  ;;  %s65_s13 = int_to_ptr.vmem [resolvable:$true] %s64_s13 }
  0x17   :  { %p5317_p9 = scmp.lt.u32.totalorder %s5313_s16, %s5747_s5 }
  0x19   :  { %p5319_p10 = pnand %p5317_p9, %p5314_p8 }
  0x1b   :  { %5322 = shalt.err (!%p5319_p10)
}
  0x1c   :  { %s5323_s22 = scalar_lea.vmem %s65_s13, 6144  ;;  %p5328_p12 = scmp.lt.s32.totalorder %s65_s13, %s65_s13 }
  0x1d   :  { %p5324_p11 = scmp.ne.s32.totalorder %s65_s13, %s5323_s22  ;;  %p5329_p13 = scmp.lt.s32.totalorder %s5323_s22, %s5323_s22 }
  0x1f   :  { %p5330_p0 = por %p5329_p13, %p5328_p12 }
  0x21   :  { %p5331_p1 = pnand %p5330_p0, %p5324_p11 }
  0x23   :  { %5334 = shalt.err (!%p5331_p1)
}
  0x24   :  { %s5459_s1 = smov 128   ;;  %s5460_s18 = smov 8  }
  0x25   :  { %70 = dma.hbm_to_vmem [thread:$0]  %s5747_s5, 6144, %s65_s13, [#allocation9], %s5459_s1, %s5459_s1, %s5460_s18  }
  0x26   :  { %s5461_s25 = smov [#allocation2]   ;;  %s5462_s27 = smov [#allocation7]  }
  0x27   :  { %s27_s26 = sshll.u32 %s5461_s25, 4  ;;  %s50_s28 = sshll.u32 %s5462_s27, 4  ;;  %s28_s26 = int_to_ptr.vmem [resolvable:$true] %s27_s26  ;;  %s5557_s28 = int_to_ptr.vmem [resolvable:$true] %s50_s28 }
  0x28   :  { %s5335_s12 = scalar_lea.hbm %s5742_s0, 896 }
  0x29   :  { %p5336_p2 = scmp.ne.s32.totalorder %s5742_s0, %s5335_s12  ;;  %p5339_p3 = scmp.lt.u32.totalorder %s5335_s12, %s5742_s0 }
  0x2b   :  { %p5341_p4 = pnand %p5339_p3, %p5336_p2 }
  0x2d   :  { %5344 = shalt.err (!%p5341_p4)
}
  0x2e   :  { %s5345_s5 = scalar_lea.vmem %s28_s26, 896  ;;  %p5350_p6 = scmp.lt.s32.totalorder %s28_s26, %s28_s26 }
  0x2f   :  { %p5346_p5 = scmp.ne.s32.totalorder %s28_s26, %s5345_s5  ;;  %p5351_p7 = scmp.lt.s32.totalorder %s5345_s5, %s5345_s5 }
  0x31   :  { %p5352_p8 = por %p5351_p7, %p5350_p6 }
  0x33   :  { %p5353_p9 = pnand %p5352_p8, %p5346_p5 }
  0x35   :  { %5356 = shalt.err (!%p5353_p9)
}
  0x36   :  { %30 = dma.hbm_to_vmem [thread:$0]  %s5742_s0, 896, %s28_s26, [#allocation3]  }
  0x37   :  { %s5357_s22 = scalar_lea.hbm %s5745_s3, 15360 }
  0x38   :  { %p5358_p10 = scmp.ne.s32.totalorder %s5745_s3, %s5357_s22  ;;  %p5361_p11 = scmp.lt.u32.totalorder %s5357_s22, %s5745_s3 }
  0x3a   :  { %p5363_p12 = pnand %p5361_p11, %p5358_p10 }
  0x3c   :  { %5366 = shalt.err (!%p5363_p12)
}
  0x3d   :  { %s5367_s25 = scalar_lea.vmem %s5557_s28, 15360  ;;  %p5372_p0 = scmp.lt.s32.totalorder %s5557_s28, %s5557_s28 }
  0x3e   :  { %p5368_p13 = scmp.ne.s32.totalorder %s5557_s28, %s5367_s25  ;;  %p5373_p1 = scmp.lt.s32.totalorder %s5367_s25, %s5367_s25 }
  0x40   :  { %p5374_p2 = por %p5373_p1, %p5372_p0 }
  0x42   :  { %p5375_p3 = pnand %p5374_p2, %p5368_p13 }
  0x44   :  { %5378 = shalt.err (!%p5375_p3)
}
  0x45   :  { %s5463_s0 = smov 192   ;;  %s5464_s26 = smov 12  }
  0x46   :  { %56 = dma.hbm_to_vmem [thread:$0]  %s5745_s3, 15360, %s5557_s28, [#allocation6], %s5463_s0, %s5463_s0, %s5464_s26  }
  0x47   :  { %s5465_s30 = smov [#allocation10]   ;;  %s5379_s16 = scalar_lea.hbm %s5749_s7, 2048 }
  0x48   :  { %s78_s12 = sshll.u32 %s5465_s30, 4  ;;  %p5380_p4 = scmp.ne.s32.totalorder %s5749_s7, %s5379_s16  ;;  %s79_s12 = int_to_ptr.vmem [resolvable:$true] %s78_s12 }
  0x49   :  { %p5383_p5 = scmp.lt.u32.totalorder %s5379_s16, %s5749_s7 }
  0x4b   :  { %p5385_p6 = pnand %p5383_p5, %p5380_p4 }
  0x4d   :  { %5388 = shalt.err (!%p5385_p6)
}
  0x4e   :  { %s5389_s20 = scalar_lea.vmem %s79_s12, 2048  ;;  %p5394_p8 = scmp.lt.s32.totalorder %s79_s12, %s79_s12 }
  0x4f   :  { %p5390_p7 = scmp.ne.s32.totalorder %s79_s12, %s5389_s20  ;;  %p5395_p9 = scmp.lt.s32.totalorder %s5389_s20, %s5389_s20 }
  0x51   :  { %p5396_p10 = por %p5395_p9, %p5394_p8 }
  0x53   :  { %p5397_p11 = pnand %p5396_p10, %p5390_p7 }
  0x55   :  { %5400 = shalt.err (!%p5397_p11)
}
  0x56   :  { %s5466_s3 = smov 64   ;;  %s5467_s28 = smov 4  }
  0x57   :  { %84 = dma.hbm_to_vmem [thread:$0]  %s5749_s7, 2048, %s79_s12, [#allocation9], %s5466_s3, %s5466_s3, %s5467_s28  }
  0x58   :  { %s5468_s1 = smov [#allocation11]   ;;  %s5401_s25 = scalar_lea.hbm %s5751_s9, 1024 }
  0x59   :  { %s92_s18 = sshll.u32 %s5468_s1, 4  ;;  %p5402_p12 = scmp.ne.s32.totalorder %s5751_s9, %s5401_s25  ;;  %s93_s18 = int_to_ptr.vmem [resolvable:$true] %s92_s18 }
  0x5a   :  { %p5405_p13 = scmp.lt.u32.totalorder %s5401_s25, %s5751_s9 }
  0x5c   :  { %p5407_p0 = pnand %p5405_p13, %p5402_p12 }
  0x5e   :  { %5410 = shalt.err (!%p5407_p0)
}
  0x5f   :  { %s5411_s30 = scalar_lea.vmem %s93_s18, 1024  ;;  %p5416_p2 = scmp.lt.s32.totalorder %s93_s18, %s93_s18 }
  0x60   :  { %p5412_p1 = scmp.ne.s32.totalorder %s93_s18, %s5411_s30  ;;  %p5417_p3 = scmp.lt.s32.totalorder %s5411_s30, %s5411_s30 }
  0x62   :  { %p5418_p4 = por %p5417_p3, %p5416_p2 }
  0x64   :  { %p5419_p5 = pnand %p5418_p4, %p5412_p1 }
  0x66   :  { %5422 = shalt.err (!%p5419_p5)
}
  0x67   :  { %98 = dma.hbm_to_vmem [thread:$0]  %s5751_s9, 1024, %s93_s18, [#allocation12], %s5466_s3, %s5466_s3, %s5467_s28  }
  0x68   :  { %5445 = dma.done.wait [#allocation3], 896  }
  0x69   :  { %5446 = vsyncadd [#allocation3], 4294966400 }
  0x6a   :  { %5447 = dma.done.wait [#allocation6], 46720  }
  0x6b   :  { %5448 = vsyncadd [#allocation6], 4294920576 }
  0x6c   :  { %5449 = dma.done.wait [#allocation9], 8192  }
  0x6d   :  { %5450 = vsyncadd [#allocation9], 4294959104 }
  0x6e   :  { %5451 = dma.done.wait [#allocation12], 1024  }
  0x6f   :  { %5452 = vsyncadd [#allocation12], 4294966272  ;;  %v4692_v0 = vld [vmem:[#allocation5 + $0x4] ss:$20 sps:$4 sm:$0xff]   ;;  %v4694_v1 = vld [vmem:[#allocation5 + $0xc] ss:$20 sps:$4 sm:$0xff]  }
  0x70   :  { %1733 = vmatprep.subr.bf16.mxu0 %v4692_v0  ;;  %v4696_v2 = vld [vmem:[#allocation5] ss:$20 sps:$4 sm:$0xff]   ;;  %v4697_v3 = vld [vmem:[#allocation5 + $0x8] ss:$20 sps:$4 sm:$0xff]   ;;  %1897 = vmatprep.subr.bf16.mxu1 %v4694_v1  ;;  %v4703_v7 = vld [vmem:[#allocation5 + $0x30] ss:$20 sps:$4 sm:$0xff]  }
  0x71   :  { %v4698_v4 = vld [vmem:[#allocation5 + $0x2c] ss:$20 sps:$4 sm:$0xff]   ;;  %1734 = vmatpush1.bf16.msra.mxu0 %v4696_v2  ;;  %1898 = vmatpush1.bf16.msra.mxu1 %v4697_v3  ;;  %v4700_v5 = vld [vmem:[#allocation5 + $0x34] ss:$20 sps:$4 sm:$0xff]   ;;  %v4706_v9 = vld [vmem:[#allocation5 + $0x5c] ss:$20 sps:$4 sm:$0xff]  }
  0x72   :  { %v4702_v6 = vld [vmem:[#allocation5 + $0x28] ss:$20 sps:$4 sm:$0xff]   ;;  %1735 = vmatprep.subr.bf16.mxu0 %v4698_v4  ;;  %1899 = vmatprep.subr.bf16.mxu1 %v4700_v5  ;;  %v4708_v10 = vld [vmem:[#allocation5 + $0x50] ss:$20 sps:$4 sm:$0xff]   ;;  %v4709_v11 = vld [vmem:[#allocation5 + $0x58] ss:$20 sps:$4 sm:$0xff]  }
  0x73   :  { %v4704_v8 = vld [vmem:[#allocation5 + $0x54] ss:$20 sps:$4 sm:$0xff]   ;;  %v4710_v12 = vld [vmem:[#allocation5 + $0x7c] ss:$20 sps:$4 sm:$0xff]   ;;  %v4712_v13 = vld [vmem:[#allocation5 + $0x84] ss:$20 sps:$4 sm:$0xff]  }
  0x74   :  { %v4714_v14 = vld [vmem:[#allocation5 + $0x78] ss:$20 sps:$4 sm:$0xff]   ;;  %v4715_v15 = vld [vmem:[#allocation5 + $0x80] ss:$20 sps:$4 sm:$0xff]   ;;  %v4721_v19 = vld [vmem:[#allocation5 + $0xa8] ss:$20 sps:$4 sm:$0xff]  }
  0x75   :  { %1736 = vmatpush1.bf16.msra.mxu0 %v4702_v6  ;;  %1900 = vmatpush1.bf16.msra.mxu1 %v4703_v7  ;;  %v4716_v16 = vld [vmem:[#allocation5 + $0xa4] ss:$20 sps:$4 sm:$0xff]   ;;  %v4718_v17 = vld [vmem:[#allocation5 + $0xac] ss:$20 sps:$4 sm:$0xff]   ;;  %v4724_v21 = vld [vmem:[#allocation5 + $0xd4] ss:$20 sps:$4 sm:$0xff]  }
  0x76   :  { %1737 = vmatprep.subr.bf16.mxu0 %v4704_v8  ;;  %1901 = vmatprep.subr.bf16.mxu1 %v4706_v9  ;;  %v4720_v18 = vld [vmem:[#allocation5 + $0xa0] ss:$20 sps:$4 sm:$0xff]   ;;  %v4726_v22 = vld [vmem:[#allocation5 + $0xc8] ss:$20 sps:$4 sm:$0xff]   ;;  %v4727_v23 = vld [vmem:[#allocation5 + $0xd0] ss:$20 sps:$4 sm:$0xff]  }
  0x77   :  { %v4722_v20 = vld [vmem:[#allocation5 + $0xcc] ss:$20 sps:$4 sm:$0xff]   ;;  %v4728_v24 = vld [vmem:[#allocation5 + $0xf4] ss:$20 sps:$4 sm:$0xff]   ;;  %v4730_v25 = vld [vmem:[#allocation5 + $0xfc] ss:$20 sps:$4 sm:$0xff]  }
  0x78   :  { %v4732_v26 = vld [vmem:[#allocation5 + $0xf0] ss:$20 sps:$4 sm:$0xff]   ;;  %v4733_v27 = vld [vmem:[#allocation5 + $0xf8] ss:$20 sps:$4 sm:$0xff]   ;;  %v4739_v31 = vld [vmem:[#allocation5 + $0x120] ss:$20 sps:$4 sm:$0xff]  }
  0x79   :  { %1738 = vmatpush1.bf16.msra.mxu0 %v4708_v10  ;;  %1902 = vmatpush1.bf16.msra.mxu1 %v4709_v11  ;;  %v4734_v28 = vld [vmem:[#allocation5 + $0x11c] ss:$20 sps:$4 sm:$0xff]   ;;  %v4736_v29 = vld [vmem:[#allocation5 + $0x124] ss:$20 sps:$4 sm:$0xff]   ;;  %v4742_v33 = vld [vmem:[#allocation5 + $0x14c] ss:$20 sps:$4 sm:$0xff]  }
  0x7a   :  { %1739 = vmatprep.subr.bf16.mxu0 %v4710_v12  ;;  %1903 = vmatprep.subr.bf16.mxu1 %v4712_v13  ;;  %v4738_v30 = vld [vmem:[#allocation5 + $0x118] ss:$20 sps:$4 sm:$0xff]   ;;  %v4744_v34 = vld [vmem:[#allocation5 + $0x140] ss:$20 sps:$4 sm:$0xff]   ;;  %v4745_v35 = vld [vmem:[#allocation5 + $0x148] ss:$20 sps:$4 sm:$0xff]  }
  0x7b   :  { %v4740_v32 = vld [vmem:[#allocation5 + $0x144] ss:$20 sps:$4 sm:$0xff]   ;;  %v4746_v36 = vld [vmem:[#allocation5 + $0x16c] ss:$20 sps:$4 sm:$0xff]   ;;  %v4748_v37 = vld [vmem:[#allocation5 + $0x174] ss:$20 sps:$4 sm:$0xff]  }
  0x7c   :  { %v4750_v38 = vld [vmem:[#allocation5 + $0x168] ss:$20 sps:$4 sm:$0xff]   ;;  %v4751_v39 = vld [vmem:[#allocation5 + $0x170] ss:$20 sps:$4 sm:$0xff]   ;;  %v4757_v43 = vld [vmem:[#allocation5 + $0x198] ss:$20 sps:$4 sm:$0xff]  }
  0x7d   :  { %1740 = vmatpush1.bf16.msra.mxu0 %v4714_v14  ;;  %1904 = vmatpush1.bf16.msra.mxu1 %v4715_v15  ;;  %v4752_v40 = vld [vmem:[#allocation5 + $0x194] ss:$20 sps:$4 sm:$0xff]   ;;  %v4754_v41 = vld [vmem:[#allocation5 + $0x19c] ss:$20 sps:$4 sm:$0xff]   ;;  %v4760_v45 = vld [vmem:[#allocation5 + $0x1c4] ss:$20 sps:$4 sm:$0xff]  }
  0x7e   :  { %1741 = vmatprep.subr.bf16.mxu0 %v4716_v16  ;;  %1905 = vmatprep.subr.bf16.mxu1 %v4718_v17  ;;  %v4756_v42 = vld [vmem:[#allocation5 + $0x190] ss:$20 sps:$4 sm:$0xff]   ;;  %v4762_v47 = vld [vmem:[#allocation5 + $0x1b8] ss:$20 sps:$4 sm:$0xff]   ;;  %v4763_v49 = vld [vmem:[#allocation5 + $0x1c0] ss:$20 sps:$4 sm:$0xff]  }
  0x7f   :  { %v4758_v44 = vld [vmem:[#allocation5 + $0x1bc] ss:$20 sps:$4 sm:$0xff]   ;;  %v4764_v50 = vld [vmem:[#allocation5 + $0x1e4] ss:$20 sps:$4 sm:$0xff]   ;;  %v4766_v51 = vld [vmem:[#allocation5 + $0x1ec] ss:$20 sps:$4 sm:$0xff]  }
  0x80   :  { %v121_v46 = vld [vmem:[#allocation2 + $0x8] sm:$0xff]  ;;  %v4769_v53 = vld [vmem:[#allocation5 + $0x1e8] ss:$20 sps:$4 sm:$0xff]   ;;  %v4770_v54 = vld [vmem:[#allocation5 + $0x20c] ss:$20 sps:$4 sm:$0xff]   ;;  %vm1729_vm0 = vcmask 130048  }
  0x81   :  { %1742 = vmatpush1.bf16.msra.mxu0 %v4720_v18  ;;  %1906 = vmatpush1.bf16.msra.mxu1 %v4721_v19  ;;  %v5612_v48 = vpack.c.bf16 %v121_v46, %v121_v46  ;;  %v4768_v52 = vld [vmem:[#allocation5 + $0x1e0] ss:$20 sps:$4 sm:$0xff]   ;;  %v4774_v56 = vld [vmem:[#allocation5 + $0x208] ss:$20 sps:$4 sm:$0xff]   ;;  %v4775_v57 = vld [vmem:[#allocation5 + $0x210] ss:$20 sps:$4 sm:$0xff]  }
  0x82   :  { %1743 = vmatprep.subr.bf16.mxu0 %v4722_v20  ;;  %1907 = vmatprep.subr.bf16.mxu1 %v4724_v21  ;;  %v4772_v55 = vld [vmem:[#allocation5 + $0x214] ss:$20 sps:$4 sm:$0xff]   ;;  %v4778_v59 = vld [vmem:[#allocation5 + $0x23c] ss:$20 sps:$4 sm:$0xff]   ;;  %v4781_v61 = vld [vmem:[#allocation5 + $0x238] ss:$20 sps:$4 sm:$0xff]  }
  0x83   :  { %1765 = vmatprep.mubr.bf16.mxu0 %v5612_v48  ;;  %1929 = vmatprep.mubr.bf16.mxu1 %v5612_v48  ;;  %v4776_v58 = vld [vmem:[#allocation5 + $0x234] ss:$20 sps:$4 sm:$0xff]   ;;  %v4780_v60 = vld [vmem:[#allocation5 + $0x230] ss:$20 sps:$4 sm:$0xff]   ;;  %v4786_v0 = vld [vmem:[#allocation5 + $0x258] ss:$20 sps:$4 sm:$0xff]  }
  0x84   :  { %v4782_v62 = vld [vmem:[#allocation5 + $0x25c] ss:$20 sps:$4 sm:$0xff]   ;;  %v4784_v63 = vld [vmem:[#allocation5 + $0x264] ss:$20 sps:$4 sm:$0xff]   ;;  %v4787_v1 = vld [vmem:[#allocation5 + $0x260] ss:$20 sps:$4 sm:$0xff]  }
  0x85   :  { %1744 = vmatpush1.bf16.msra.mxu0 %v4726_v22  ;;  %1908 = vmatpush1.bf16.msra.mxu1 %v4727_v23  ;;  %v120_v2 = vld [vmem:[#allocation2] sm:$0xff]  ;;  %v4790_v3 = vld [vmem:[#allocation5 + $0x284] ss:$20 sps:$4 sm:$0xff]   ;;  %v4788_v6 = vld [vmem:[#allocation5 + $0x280] ss:$20 sps:$4 sm:$0xff]   ;;  %vm5471_vm1 = vmmov 0  }
  0x86   :  { %1745 = vmatprep.subr.bf16.mxu0 %v4728_v24  ;;  %1909 = vmatprep.subr.bf16.mxu1 %v4730_v25  ;;  %v4793_v4 = vld [vmem:[#allocation5 + $0x28c] ss:$20 sps:$4 sm:$0xff]   ;;  %v5616_v5 = vpack.c.bf16 %v120_v2, %v120_v2  ;;  %v4791_v7 = vld [vmem:[#allocation5 + $0x288] ss:$20 sps:$4 sm:$0xff]   ;;  %v4797_v11 = vld [vmem:[#allocation5 + $0x2b0] ss:$20 sps:$4 sm:$0xff]  }
  0x87   :  { %v4796_v8 = vld [vmem:[#allocation5 + $0x2ac] ss:$20 sps:$4 sm:$0xff]   ;;  %v4799_v9 = vld [vmem:[#allocation5 + $0x2b4] ss:$20 sps:$4 sm:$0xff]   ;;  %v4805_v13 = vld [vmem:[#allocation5 + $0x2dc] ss:$20 sps:$4 sm:$0xff]  }
  0x88   :  { %v4794_v10 = vld [vmem:[#allocation5 + $0x2a8] ss:$20 sps:$4 sm:$0xff]   ;;  %v4800_v14 = vld [vmem:[#allocation5 + $0x2d0] ss:$20 sps:$4 sm:$0xff]   ;;  %v4803_v15 = vld [vmem:[#allocation5 + $0x2d8] ss:$20 sps:$4 sm:$0xff]  }
  0x89   :  { %1746 = vmatpush1.bf16.msra.mxu0 %v4732_v26  ;;  %1910 = vmatpush1.bf16.msra.mxu1 %v4733_v27  ;;  %v4802_v12 = vld [vmem:[#allocation5 + $0x2d4] ss:$20 sps:$4 sm:$0xff]   ;;  %v4808_v16 = vld [vmem:[#allocation5 + $0x2fc] ss:$20 sps:$4 sm:$0xff]   ;;  %v4811_v17 = vld [vmem:[#allocation5 + $0x304] ss:$20 sps:$4 sm:$0xff]  }
  0x8a   :  { %1747 = vmatprep.subr.bf16.mxu0 %v4734_v28  ;;  %1911 = vmatprep.subr.bf16.mxu1 %v4736_v29  ;;  %v4806_v18 = vld [vmem:[#allocation5 + $0x2f8] ss:$20 sps:$4 sm:$0xff]   ;;  %v4809_v19 = vld [vmem:[#allocation5 + $0x300] ss:$20 sps:$4 sm:$0xff]   ;;  %v4815_v23 = vld [vmem:[#allocation5 + $0x328] ss:$20 sps:$4 sm:$0xff]  }
  0x8b   :  { %v4814_v20 = vld [vmem:[#allocation5 + $0x324] ss:$20 sps:$4 sm:$0xff]   ;;  %v4817_v21 = vld [vmem:[#allocation5 + $0x32c] ss:$20 sps:$4 sm:$0xff]   ;;  %v4823_v25 = vld [vmem:[#allocation5 + $0x354] ss:$20 sps:$4 sm:$0xff]  }
  0x8c   :  { %v4812_v22 = vld [vmem:[#allocation5 + $0x320] ss:$20 sps:$4 sm:$0xff]   ;;  %v4818_v26 = vld [vmem:[#allocation5 + $0x348] ss:$20 sps:$4 sm:$0xff]   ;;  %v4821_v27 = vld [vmem:[#allocation5 + $0x350] ss:$20 sps:$4 sm:$0xff]  }
  0x8d   :  { %1748 = vmatpush1.bf16.msra.mxu0 %v4738_v30  ;;  %1912 = vmatpush1.bf16.msra.mxu1 %v4739_v31  ;;  %v4820_v24 = vld [vmem:[#allocation5 + $0x34c] ss:$20 sps:$4 sm:$0xff]   ;;  %v4826_v28 = vld [vmem:[#allocation5 + $0x374] ss:$20 sps:$4 sm:$0xff]   ;;  %v4829_v29 = vld [vmem:[#allocation5 + $0x37c] ss:$20 sps:$4 sm:$0xff]  }
  0x8e   :  { %1749 = vmatprep.subr.bf16.mxu0 %v4740_v32  ;;  %1913 = vmatprep.subr.bf16.mxu1 %v4742_v33  ;;  %v123_v30 = vld [vmem:[#allocation2 + $0x18] sm:$0xff]  ;;  %v4827_v33 = vld [vmem:[#allocation5 + $0x378] ss:$20 sps:$4 sm:$0xff]   ;;  %v4850_v46 = vld [vmem:[#allocation5 + $0x414] ss:$20 sps:$4 sm:$0xff]   ;;  %s5472_s19 = smov [#allocation13]  }
  0x8f   :  { %v4824_v31 = vld [vmem:[#allocation5 + $0x370] ss:$20 sps:$4 sm:$0xff]   ;;  %v5620_v32 = vpack.c.bf16 %v123_v30, %v123_v30  ;;  %v4875_v2 = vld [vmem:[#allocation5 + $0x4b8] ss:$20 sps:$4 sm:$0xff]   ;;  %v4908_v30 = vld [vmem:[#allocation5 + $0x5a0] ss:$20 sps:$4 sm:$0xff]  }
  0x90   :  { %s3978_s20 = sshll.u32 %s5472_s19, 4  ;;  %s3979_s20 = int_to_ptr.vmem [resolvable:$true] %s3978_s20 }
  0x91   :  { %1750 = vmatpush1.bf16.msra.mxu0 %v4744_v34  ;;  %1914 = vmatpush1.bf16.msra.mxu1 %v4745_v35  ;;  %v4832_v34 = vld [vmem:[#allocation5 + $0x39c] ss:$20 sps:$4 sm:$0xff]   ;;  %v4835_v35 = vld [vmem:[#allocation5 + $0x3a4] ss:$20 sps:$4 sm:$0xff]   ;;  %p5428_p7 = scmp.lt.s32.totalorder %s3979_s20, %s3979_s20 }
  0x92   :  { %1751 = vmatprep.subr.bf16.mxu0 %v4746_v36  ;;  %1915 = vmatprep.subr.bf16.mxu1 %v4748_v37  ;;  %v4830_v36 = vld [vmem:[#allocation5 + $0x398] ss:$20 sps:$4 sm:$0xff]   ;;  %v4833_v37 = vld [vmem:[#allocation5 + $0x3a0] ss:$20 sps:$4 sm:$0xff]  }
  0x95   :  { %1752 = vmatpush1.bf16.msra.mxu0 %v4750_v38  ;;  %1916 = vmatpush1.bf16.msra.mxu1 %v4751_v39  ;;  %v4838_v38 = vld [vmem:[#allocation5 + $0x3c4] ss:$20 sps:$4 sm:$0xff]   ;;  %v4841_v39 = vld [vmem:[#allocation5 + $0x3cc] ss:$20 sps:$4 sm:$0xff]  }
  0x96   :  { %1753 = vmatprep.subr.bf16.mxu0 %v4752_v40  ;;  %1917 = vmatprep.subr.bf16.mxu1 %v4754_v41  ;;  %v4836_v40 = vld [vmem:[#allocation5 + $0x3c0] ss:$20 sps:$4 sm:$0xff]   ;;  %v4839_v41 = vld [vmem:[#allocation5 + $0x3c8] ss:$20 sps:$4 sm:$0xff]  }
  0x99   :  { %1754 = vmatpush1.bf16.msra.mxu0 %v4756_v42  ;;  %1918 = vmatpush1.bf16.msra.mxu1 %v4757_v43  ;;  %v4844_v42 = vld [vmem:[#allocation5 + $0x3ec] ss:$20 sps:$4 sm:$0xff]   ;;  %v4847_v43 = vld [vmem:[#allocation5 + $0x3f4] ss:$20 sps:$4 sm:$0xff]  }
  0x9a   :  { %1755 = vmatprep.subr.bf16.mxu0 %v4758_v44  ;;  %1919 = vmatprep.subr.bf16.mxu1 %v4760_v45  ;;  %v4842_v44 = vld [vmem:[#allocation5 + $0x3e8] ss:$20 sps:$4 sm:$0xff]   ;;  %v4845_v45 = vld [vmem:[#allocation5 + $0x3f0] ss:$20 sps:$4 sm:$0xff]  }
  0x9d   :  { %1756 = vmatpush1.bf16.msra.mxu0 %v4762_v47  ;;  %1920 = vmatpush1.bf16.msra.mxu1 %v4763_v49  ;;  %v4853_v47 = vld [vmem:[#allocation5 + $0x41c] ss:$20 sps:$4 sm:$0xff]  }
  0x9e   :  { %1757 = vmatprep.subr.bf16.mxu0 %v4764_v50  ;;  %1921 = vmatprep.subr.bf16.mxu1 %v4766_v51  ;;  %v4848_v49 = vld [vmem:[#allocation5 + $0x410] ss:$20 sps:$4 sm:$0xff]   ;;  %v4851_v50 = vld [vmem:[#allocation5 + $0x418] ss:$20 sps:$4 sm:$0xff]  }
  0x9f   :  { %v4856_v51 = vld [vmem:[#allocation5 + $0x43c] ss:$20 sps:$4 sm:$0xff]  }
  0xa1   :  { %1758 = vmatpush1.bf16.msra.mxu0 %v4768_v52  ;;  %1922 = vmatpush1.bf16.msra.mxu1 %v4769_v53  ;;  %v4859_v52 = vld [vmem:[#allocation5 + $0x444] ss:$20 sps:$4 sm:$0xff]  }
  0xa2   :  { %1759 = vmatprep.subr.bf16.mxu0 %v4770_v54  ;;  %1923 = vmatprep.subr.bf16.mxu1 %v4772_v55  ;;  %v4854_v53 = vld [vmem:[#allocation5 + $0x438] ss:$20 sps:$4 sm:$0xff]   ;;  %v4857_v54 = vld [vmem:[#allocation5 + $0x440] ss:$20 sps:$4 sm:$0xff]  }
  0xa3   :  { %v4862_v55 = vld [vmem:[#allocation5 + $0x464] ss:$20 sps:$4 sm:$0xff]  }
  0xa5   :  { %1760 = vmatpush1.bf16.msra.mxu0 %v4774_v56  ;;  %1924 = vmatpush1.bf16.msra.mxu1 %v4775_v57  ;;  %v4865_v56 = vld [vmem:[#allocation5 + $0x46c] ss:$20 sps:$4 sm:$0xff]  }
  0xa6   :  { %1761 = vmatprep.subr.bf16.mxu0 %v4776_v58  ;;  %1925 = vmatprep.subr.bf16.mxu1 %v4778_v59  ;;  %v4860_v57 = vld [vmem:[#allocation5 + $0x460] ss:$20 sps:$4 sm:$0xff]   ;;  %v4863_v58 = vld [vmem:[#allocation5 + $0x468] ss:$20 sps:$4 sm:$0xff]  }
  0xa7   :  { %v4868_v59 = vld [vmem:[#allocation5 + $0x48c] ss:$20 sps:$4 sm:$0xff]  }
  0xa9   :  { %1762 = vmatpush1.bf16.msra.mxu0 %v4780_v60  ;;  %1926 = vmatpush1.bf16.msra.mxu1 %v4781_v61  ;;  %v4871_v60 = vld [vmem:[#allocation5 + $0x494] ss:$20 sps:$4 sm:$0xff]  }
  0xaa   :  { %1763 = vmatprep.subr.bf16.mxu0 %v4782_v62  ;;  %1927 = vmatprep.subr.bf16.mxu1 %v4784_v63  ;;  %v4866_v61 = vld [vmem:[#allocation5 + $0x488] ss:$20 sps:$4 sm:$0xff]   ;;  %v4869_v62 = vld [vmem:[#allocation5 + $0x490] ss:$20 sps:$4 sm:$0xff]  }
  0xab   :  { %v4874_v63 = vld [vmem:[#allocation5 + $0x4b4] ss:$20 sps:$4 sm:$0xff]  }
  0xad   :  { %1764 = vmatpush1.bf16.msra.mxu0 %v4786_v0  ;;  %1928 = vmatpush1.bf16.msra.mxu1 %v4787_v1  ;;  %v4877_v0 = vld [vmem:[#allocation5 + $0x4bc] ss:$20 sps:$4 sm:$0xff]  }
  0xae   :  { %1774 = vmatprep.subr.bf16.mxu0 %v4790_v3  ;;  %1938 = vmatprep.subr.bf16.mxu1 %v4793_v4  ;;  %v4872_v1 = vld [vmem:[#allocation5 + $0x4b0] ss:$20 sps:$4 sm:$0xff]  }
  0xaf   :  { %v4880_v3 = vld [vmem:[#allocation5 + $0x4dc] ss:$20 sps:$4 sm:$0xff]   ;;  %v4883_v4 = vld [vmem:[#allocation5 + $0x4e4] ss:$20 sps:$4 sm:$0xff]  }
  0xb0   :  { %1766 = vmatmul.mubr.bf16.vlgmr.msra.gmra.mrb[0].mxu0 %v5616_v5  ;;  %1930 = vmatmul.mubr.bf16.vlgmr.msra.gmra.mrb[0].mxu1 %v5616_v5 }
  0xb1   :  { %1775 = vmatpush1.bf16.msra.mxu0 %v4788_v6  ;;  %1939 = vmatpush1.bf16.msra.mxu1 %v4791_v7  ;;  %v4878_v6 = vld [vmem:[#allocation5 + $0x4d8] ss:$20 sps:$4 sm:$0xff]   ;;  %v4881_v7 = vld [vmem:[#allocation5 + $0x4e0] ss:$20 sps:$4 sm:$0xff]  }
  0xb2   :  { %1776 = vmatprep.subr.bf16.mxu0 %v4796_v8  ;;  %1940 = vmatprep.subr.bf16.mxu1 %v4799_v9  ;;  %v4886_v8 = vld [vmem:[#allocation5 + $0x504] ss:$20 sps:$4 sm:$0xff]  }
  0xb3   :  { %1806 = vmatprep.mubr.bf16.mxu0 %v5620_v32  ;;  %1970 = vmatprep.mubr.bf16.mxu1 %v5620_v32  ;;  %v122_v9 = vld [vmem:[#allocation2 + $0x10] sm:$0xff] }
  0xb5   :  { %1777 = vmatpush1.bf16.msra.mxu0 %v4794_v10  ;;  %1941 = vmatpush1.bf16.msra.mxu1 %v4797_v11  ;;  %v4889_v10 = vld [vmem:[#allocation5 + $0x50c] ss:$20 sps:$4 sm:$0xff]  }
  0xb6   :  { %1778 = vmatprep.subr.bf16.mxu0 %v4802_v12  ;;  %1942 = vmatprep.subr.bf16.mxu1 %v4805_v13  ;;  %v4884_v11 = vld [vmem:[#allocation5 + $0x500] ss:$20 sps:$4 sm:$0xff]   ;;  %v5624_v12 = vpack.c.bf16 %v122_v9, %v122_v9  ;;  %v4887_v13 = vld [vmem:[#allocation5 + $0x508] ss:$20 sps:$4 sm:$0xff]   ;;  %v4968_v9 = vld [vmem:[#allocation5 + $0x730] ss:$20 sps:$4 sm:$0xff]  }
  0xb9   :  { %1779 = vmatpush1.bf16.msra.mxu0 %v4800_v14  ;;  %1943 = vmatpush1.bf16.msra.mxu1 %v4803_v15  ;;  %v4892_v14 = vld [vmem:[#allocation5 + $0x52c] ss:$20 sps:$4 sm:$0xff]   ;;  %v4895_v15 = vld [vmem:[#allocation5 + $0x534] ss:$20 sps:$4 sm:$0xff]  }
  0xba   :  { %1780 = vmatprep.subr.bf16.mxu0 %v4808_v16  ;;  %1944 = vmatprep.subr.bf16.mxu1 %v4811_v17  ;;  %v125_v16 = vld [vmem:[#allocation2 + $0x28] sm:$0xff] }
  0xbb   :  { %v5626_v17 = vpack.c.bf16 %v125_v16, %v125_v16  ;;  %v124_v16 = vld [vmem:[#allocation2 + $0x20] sm:$0xff] }
  0xbd   :  { %1781 = vmatpush1.bf16.msra.mxu0 %v4806_v18  ;;  %1945 = vmatpush1.bf16.msra.mxu1 %v4809_v19  ;;  %v4890_v18 = vld [vmem:[#allocation5 + $0x528] ss:$20 sps:$4 sm:$0xff]   ;;  %v4893_v19 = vld [vmem:[#allocation5 + $0x530] ss:$20 sps:$4 sm:$0xff]  }
  0xbe   :  { %1782 = vmatprep.subr.bf16.mxu0 %v4814_v20  ;;  %1946 = vmatprep.subr.bf16.mxu1 %v4817_v21  ;;  %v4898_v20 = vld [vmem:[#allocation5 + $0x554] ss:$20 sps:$4 sm:$0xff]   ;;  %v4901_v21 = vld [vmem:[#allocation5 + $0x55c] ss:$20 sps:$4 sm:$0xff]  }
  0xc1   :  { %1783 = vmatpush1.bf16.msra.mxu0 %v4812_v22  ;;  %1947 = vmatpush1.bf16.msra.mxu1 %v4815_v23  ;;  %v4896_v22 = vld [vmem:[#allocation5 + $0x550] ss:$20 sps:$4 sm:$0xff]   ;;  %v4899_v23 = vld [vmem:[#allocation5 + $0x558] ss:$20 sps:$4 sm:$0xff]  }
  0xc2   :  { %1784 = vmatprep.subr.bf16.mxu0 %v4820_v24  ;;  %1948 = vmatprep.subr.bf16.mxu1 %v4823_v25  ;;  %v4904_v24 = vld [vmem:[#allocation5 + $0x57c] ss:$20 sps:$4 sm:$0xff]   ;;  %v4907_v25 = vld [vmem:[#allocation5 + $0x584] ss:$20 sps:$4 sm:$0xff]  }
  0xc5   :  { %1785 = vmatpush1.bf16.msra.mxu0 %v4818_v26  ;;  %1949 = vmatpush1.bf16.msra.mxu1 %v4821_v27  ;;  %v4902_v26 = vld [vmem:[#allocation5 + $0x578] ss:$20 sps:$4 sm:$0xff]   ;;  %v4905_v27 = vld [vmem:[#allocation5 + $0x580] ss:$20 sps:$4 sm:$0xff]  }
  0xc6   :  { %1786 = vmatprep.subr.bf16.mxu0 %v4826_v28  ;;  %1950 = vmatprep.subr.bf16.mxu1 %v4829_v29  ;;  %v4910_v28 = vld [vmem:[#allocation5 + $0x5a4] ss:$20 sps:$4 sm:$0xff]   ;;  %v4913_v29 = vld [vmem:[#allocation5 + $0x5ac] ss:$20 sps:$4 sm:$0xff]  }
  0xc9   :  { %1787 = vmatpush1.bf16.msra.mxu0 %v4824_v31  ;;  %1951 = vmatpush1.bf16.msra.mxu1 %v4827_v33  ;;  %v4911_v31 = vld [vmem:[#allocation5 + $0x5a8] ss:$20 sps:$4 sm:$0xff]   ;;  %v4916_v33 = vld [vmem:[#allocation5 + $0x5cc] ss:$20 sps:$4 sm:$0xff]  }
  0xca   :  { %1788 = vmatprep.subr.bf16.mxu0 %v4832_v34  ;;  %1952 = vmatprep.subr.bf16.mxu1 %v4835_v35  ;;  %v4919_v34 = vld [vmem:[#allocation5 + $0x5d4] ss:$20 sps:$4 sm:$0xff]  }
  0xcb   :  { %v4914_v35 = vld [vmem:[#allocation5 + $0x5c8] ss:$20 sps:$4 sm:$0xff]  }
  0xcd   :  { %1789 = vmatpush1.bf16.msra.mxu0 %v4830_v36  ;;  %1953 = vmatpush1.bf16.msra.mxu1 %v4833_v37  ;;  %v4917_v36 = vld [vmem:[#allocation5 + $0x5d0] ss:$20 sps:$4 sm:$0xff]   ;;  %v4922_v37 = vld [vmem:[#allocation5 + $0x5f4] ss:$20 sps:$4 sm:$0xff]  }
  0xce   :  { %1790 = vmatprep.subr.bf16.mxu0 %v4838_v38  ;;  %1954 = vmatprep.subr.bf16.mxu1 %v4841_v39  ;;  %v4925_v38 = vld [vmem:[#allocation5 + $0x5fc] ss:$20 sps:$4 sm:$0xff]  }
  0xcf   :  { %v4920_v39 = vld [vmem:[#allocation5 + $0x5f0] ss:$20 sps:$4 sm:$0xff]  }
  0xd1   :  { %1791 = vmatpush1.bf16.msra.mxu0 %v4836_v40  ;;  %1955 = vmatpush1.bf16.msra.mxu1 %v4839_v41  ;;  %v4923_v40 = vld [vmem:[#allocation5 + $0x5f8] ss:$20 sps:$4 sm:$0xff]   ;;  %v4928_v41 = vld [vmem:[#allocation5 + $0x61c] ss:$20 sps:$4 sm:$0xff]  }
  0xd2   :  { %1792 = vmatprep.subr.bf16.mxu0 %v4844_v42  ;;  %1956 = vmatprep.subr.bf16.mxu1 %v4847_v43  ;;  %v4931_v42 = vld [vmem:[#allocation5 + $0x624] ss:$20 sps:$4 sm:$0xff]  }
  0xd3   :  { %v4926_v43 = vld [vmem:[#allocation5 + $0x618] ss:$20 sps:$4 sm:$0xff]  }
  0xd5   :  { %1793 = vmatpush1.bf16.msra.mxu0 %v4842_v44  ;;  %1957 = vmatpush1.bf16.msra.mxu1 %v4845_v45  ;;  %v4929_v44 = vld [vmem:[#allocation5 + $0x620] ss:$20 sps:$4 sm:$0xff]   ;;  %v4934_v45 = vld [vmem:[#allocation5 + $0x644] ss:$20 sps:$4 sm:$0xff]  }
  0xd6   :  { %1794 = vmatprep.subr.bf16.mxu0 %v4850_v46  ;;  %1958 = vmatprep.subr.bf16.mxu1 %v4853_v47  ;;  %v4937_v46 = vld [vmem:[#allocation5 + $0x64c] ss:$20 sps:$4 sm:$0xff]  }
  0xd7   :  { %v4932_v47 = vld [vmem:[#allocation5 + $0x640] ss:$20 sps:$4 sm:$0xff]  }
  0xd9   :  { %1795 = vmatpush1.bf16.msra.mxu0 %v4848_v49  ;;  %1959 = vmatpush1.bf16.msra.mxu1 %v4851_v50  ;;  %v4935_v49 = vld [vmem:[#allocation5 + $0x648] ss:$20 sps:$4 sm:$0xff]   ;;  %v4940_v50 = vld [vmem:[#allocation5 + $0x66c] ss:$20 sps:$4 sm:$0xff]  }
  0xda   :  { %1796 = vmatprep.subr.bf16.mxu0 %v4856_v51  ;;  %1960 = vmatprep.subr.bf16.mxu1 %v4859_v52  ;;  %v4943_v51 = vld [vmem:[#allocation5 + $0x674] ss:$20 sps:$4 sm:$0xff]  }
  0xdb   :  { %v4938_v52 = vld [vmem:[#allocation5 + $0x668] ss:$20 sps:$4 sm:$0xff]  }
  0xdd   :  { %1797 = vmatpush1.bf16.msra.mxu0 %v4854_v53  ;;  %1961 = vmatpush1.bf16.msra.mxu1 %v4857_v54  ;;  %v4941_v53 = vld [vmem:[#allocation5 + $0x670] ss:$20 sps:$4 sm:$0xff]   ;;  %v4946_v54 = vld [vmem:[#allocation5 + $0x694] ss:$20 sps:$4 sm:$0xff]  }
  0xde   :  { %1798 = vmatprep.subr.bf16.mxu0 %v4862_v55  ;;  %1962 = vmatprep.subr.bf16.mxu1 %v4865_v56  ;;  %v4949_v55 = vld [vmem:[#allocation5 + $0x69c] ss:$20 sps:$4 sm:$0xff]  }
  0xdf   :  { %v4944_v56 = vld [vmem:[#allocation5 + $0x690] ss:$20 sps:$4 sm:$0xff]  }
  0xe1   :  { %1799 = vmatpush1.bf16.msra.mxu0 %v4860_v57  ;;  %1963 = vmatpush1.bf16.msra.mxu1 %v4863_v58  ;;  %v4947_v57 = vld [vmem:[#allocation5 + $0x698] ss:$20 sps:$4 sm:$0xff]   ;;  %v4952_v58 = vld [vmem:[#allocation5 + $0x6bc] ss:$20 sps:$4 sm:$0xff]  }
  0xe2   :  { %1800 = vmatprep.subr.bf16.mxu0 %v4868_v59  ;;  %1964 = vmatprep.subr.bf16.mxu1 %v4871_v60  ;;  %v4955_v59 = vld [vmem:[#allocation5 + $0x6c4] ss:$20 sps:$4 sm:$0xff]  }
  0xe3   :  { %v4950_v60 = vld [vmem:[#allocation5 + $0x6b8] ss:$20 sps:$4 sm:$0xff]  }
  0xe5   :  { %1801 = vmatpush1.bf16.msra.mxu0 %v4866_v61  ;;  %1965 = vmatpush1.bf16.msra.mxu1 %v4869_v62  ;;  %v4953_v61 = vld [vmem:[#allocation5 + $0x6c0] ss:$20 sps:$4 sm:$0xff]   ;;  %v4958_v62 = vld [vmem:[#allocation5 + $0x6e4] ss:$20 sps:$4 sm:$0xff]  }
  0xe6   :  { %1802 = vmatprep.subr.bf16.mxu0 %v4874_v63  ;;  %1966 = vmatprep.subr.bf16.mxu1 %v4877_v0  ;;  %v4961_v63 = vld [vmem:[#allocation5 + $0x6ec] ss:$20 sps:$4 sm:$0xff]  }
  0xe7   :  { %v4956_v0 = vld [vmem:[#allocation5 + $0x6e0] ss:$20 sps:$4 sm:$0xff]  }
  0xe9   :  { %1803 = vmatpush1.bf16.msra.mxu0 %v4872_v1  ;;  %1967 = vmatpush1.bf16.msra.mxu1 %v4875_v2  ;;  %v4959_v1 = vld [vmem:[#allocation5 + $0x6e8] ss:$20 sps:$4 sm:$0xff]   ;;  %v4964_v2 = vld [vmem:[#allocation5 + $0x70c] ss:$20 sps:$4 sm:$0xff]  }
  0xea   :  { %1804 = vmatprep.subr.bf16.mxu0 %v4880_v3  ;;  %1968 = vmatprep.subr.bf16.mxu1 %v4883_v4  ;;  %v4967_v3 = vld [vmem:[#allocation5 + $0x714] ss:$20 sps:$4 sm:$0xff]  }
  0xeb   :  { %v4962_v4 = vld [vmem:[#allocation5 + $0x708] ss:$20 sps:$4 sm:$0xff]  }
  0xed   :  { %1805 = vmatpush1.bf16.msra.mxu0 %v4878_v6  ;;  %1969 = vmatpush1.bf16.msra.mxu1 %v4881_v7  ;;  %v4965_v6 = vld [vmem:[#allocation5 + $0x710] ss:$20 sps:$4 sm:$0xff]   ;;  %v4970_v7 = vld [vmem:[#allocation5 + $0x734] ss:$20 sps:$4 sm:$0xff]  }
  0xee   :  { %1815 = vmatprep.subr.bf16.mxu0 %v4886_v8  ;;  %1979 = vmatprep.subr.bf16.mxu1 %v4889_v10  ;;  %v4973_v8 = vld [vmem:[#allocation5 + $0x73c] ss:$20 sps:$4 sm:$0xff]   ;;  %v4971_v10 = vld [vmem:[#allocation5 + $0x738] ss:$20 sps:$4 sm:$0xff]  }
  0xf0   :  { %1807 = vmatmul.mubr.bf16.vlgmr.msra.gmra.mrb[0].mxu0 %v5624_v12  ;;  %1971 = vmatmul.mubr.bf16.vlgmr.msra.gmra.mrb[0].mxu1 %v5624_v12 }
  0xf1   :  { %1816 = vmatpush1.bf16.msra.mxu0 %v4884_v11  ;;  %1980 = vmatpush1.bf16.msra.mxu1 %v4887_v13  ;;  %v4976_v11 = vld [vmem:[#allocation5 + $0x75c] ss:$20 sps:$4 sm:$0xff]   ;;  %v4979_v13 = vld [vmem:[#allocation5 + $0x764] ss:$20 sps:$4 sm:$0xff]  }
  0xf2   :  { %1817 = vmatprep.subr.bf16.mxu0 %v4892_v14  ;;  %1981 = vmatprep.subr.bf16.mxu1 %v4895_v15  ;;  %v4974_v14 = vld [vmem:[#allocation5 + $0x758] ss:$20 sps:$4 sm:$0xff]   ;;  %v4977_v15 = vld [vmem:[#allocation5 + $0x760] ss:$20 sps:$4 sm:$0xff]  }
  0xf3   :  { %1847 = vmatprep.mubr.bf16.mxu0 %v5626_v17  ;;  %2011 = vmatprep.mubr.bf16.mxu1 %v5626_v17 }
  0xf5   :  { %1818 = vmatpush1.bf16.msra.mxu0 %v4890_v18  ;;  %1982 = vmatpush1.bf16.msra.mxu1 %v4893_v19  ;;  %v4982_v18 = vld [vmem:[#allocation5 + $0x784] ss:$20 sps:$4 sm:$0xff]   ;;  %v4985_v19 = vld [vmem:[#allocation5 + $0x78c] ss:$20 sps:$4 sm:$0xff]  }
  0xf6   :  { %1819 = vmatprep.subr.bf16.mxu0 %v4898_v20  ;;  %1983 = vmatprep.subr.bf16.mxu1 %v4901_v21  ;;  %v5632_v20 = vpack.c.bf16 %v124_v16, %v124_v16  ;;  %v4980_v21 = vld [vmem:[#allocation5 + $0x780] ss:$20 sps:$4 sm:$0xff]   ;;  %v5049_v16 = vld [vmem:[#allocation7 + $0x64] ss:$12 sps:$4 sm:$0xff]  }
  0xf9   :  { %1820 = vmatpush1.bf16.msra.mxu0 %v4896_v22  ;;  %1984 = vmatpush1.bf16.msra.mxu1 %v4899_v23  ;;  %v4983_v22 = vld [vmem:[#allocation5 + $0x788] ss:$20 sps:$4 sm:$0xff]   ;;  %v4986_v23 = vld [vmem:[#allocation5 + $0x150] ss:$20 sps:$4 sm:$0xff]  }
  0xfa   :  { %1821 = vmatprep.subr.bf16.mxu0 %v4904_v24  ;;  %1985 = vmatprep.subr.bf16.mxu1 %v4907_v25  ;;  %v5002_v24 = vld [vmem:[#allocation5 + $0x3d0] ss:$20 sps:$4 sm:$0xff]   ;;  %v5469_v25 = vmov 0  }
  0xfd   :  { %1822 = vmatpush1.bf16.msra.mxu0 %v4902_v26  ;;  %1986 = vmatpush1.bf16.msra.mxu1 %v4905_v27  ;;  %v126_v26 = vld [vmem:[#allocation2 + $0x30] sm:$0xff] }
  0xfe   :  { %1823 = vmatprep.subr.bf16.mxu0 %v4910_v28  ;;  %1987 = vmatprep.subr.bf16.mxu1 %v4913_v29  ;;  %v5638_v27 = vpack.c.bf16 %v126_v26, %v126_v26  ;;  %v4987_v28 = vld [vmem:[#allocation5 + $0x10] ss:$20 sps:$4 sm:$0xff]   ;;  %v5055_v26 = vld [vmem:[#allocation7 + $0x94] ss:$12 sps:$4 sm:$0xff]  }
  0xff   :  { %v5003_v29 = vld [vmem:[#allocation5 + $0x290] ss:$20 sps:$4 sm:$0xff]  }
 0x101   :  { %1824 = vmatpush1.bf16.msra.mxu0 %v4908_v30  ;;  %1988 = vmatpush1.bf16.msra.mxu1 %v4911_v31  ;;  %v4988_v30 = vld [vmem:[#allocation5 + $0x178] ss:$20 sps:$4 sm:$0xff]  }
 0x102   :  { %1825 = vmatprep.subr.bf16.mxu0 %v4916_v33  ;;  %1989 = vmatprep.subr.bf16.mxu1 %v4919_v34  ;;  %v5005_v31 = vld [vmem:[#allocation5 + $0x3f8] ss:$20 sps:$4 sm:$0xff]   ;;  %v4990_v34 = vld [vmem:[#allocation5 + $0x1a0] ss:$20 sps:$4 sm:$0xff]  }
 0x103   :  { %v4989_v33 = vld [vmem:[#allocation5 + $0x38] ss:$20 sps:$4 sm:$0xff]  }
 0x105   :  { %1826 = vmatpush1.bf16.msra.mxu0 %v4914_v35  ;;  %1990 = vmatpush1.bf16.msra.mxu1 %v4917_v36  ;;  %v5007_v35 = vld [vmem:[#allocation5 + $0x2b8] ss:$20 sps:$4 sm:$0xff]   ;;  %v5009_v36 = vld [vmem:[#allocation5 + $0x420] ss:$20 sps:$4 sm:$0xff]  }
 0x106   :  { %1827 = vmatprep.subr.bf16.mxu0 %v4922_v37  ;;  %1991 = vmatprep.subr.bf16.mxu1 %v4925_v38  ;;  %v4991_v37 = vld [vmem:[#allocation5 + $0x60] ss:$20 sps:$4 sm:$0xff]   ;;  %v4992_v38 = vld [vmem:[#allocation5 + $0x1c8] ss:$20 sps:$4 sm:$0xff]  }
 0x109   :  { %1828 = vmatpush1.bf16.msra.mxu0 %v4920_v39  ;;  %1992 = vmatpush1.bf16.msra.mxu1 %v4923_v40  ;;  %v5011_v39 = vld [vmem:[#allocation5 + $0x2e0] ss:$20 sps:$4 sm:$0xff]   ;;  %v5013_v40 = vld [vmem:[#allocation5 + $0x448] ss:$20 sps:$4 sm:$0xff]  }
 0x10a   :  { %1829 = vmatprep.subr.bf16.mxu0 %v4928_v41  ;;  %1993 = vmatprep.subr.bf16.mxu1 %v4931_v42  ;;  %v4993_v41 = vld [vmem:[#allocation5 + $0x88] ss:$20 sps:$4 sm:$0xff]  }
 0x10b   :  { %v5015_v42 = vld [vmem:[#allocation5 + $0x308] ss:$20 sps:$4 sm:$0xff]  }
 0x10d   :  { %1830 = vmatpush1.bf16.msra.mxu0 %v4926_v43  ;;  %1994 = vmatpush1.bf16.msra.mxu1 %v4929_v44  ;;  %v4994_v43 = vld [vmem:[#allocation5 + $0x1f0] ss:$20 sps:$4 sm:$0xff]  }
 0x10e   :  { %1831 = vmatprep.subr.bf16.mxu0 %v4934_v45  ;;  %1995 = vmatprep.subr.bf16.mxu1 %v4937_v46  ;;  %v5017_v44 = vld [vmem:[#allocation5 + $0x470] ss:$20 sps:$4 sm:$0xff]   ;;  %v4996_v46 = vld [vmem:[#allocation5 + $0x218] ss:$20 sps:$4 sm:$0xff]  }
 0x10f   :  { %v5019_v45 = vld [vmem:[#allocation5 + $0x330] ss:$20 sps:$4 sm:$0xff]  }
 0x111   :  { %1832 = vmatpush1.bf16.msra.mxu0 %v4932_v47  ;;  %1996 = vmatpush1.bf16.msra.mxu1 %v4935_v49  ;;  %v5021_v47 = vld [vmem:[#allocation5 + $0x498] ss:$20 sps:$4 sm:$0xff]  }
 0x112   :  { %1833 = vmatprep.subr.bf16.mxu0 %v4940_v50  ;;  %1997 = vmatprep.subr.bf16.mxu1 %v4943_v51  ;;  %v5023_v49 = vld [vmem:[#allocation5 + $0x358] ss:$20 sps:$4 sm:$0xff]   ;;  %v4998_v50 = vld [vmem:[#allocation5 + $0x240] ss:$20 sps:$4 sm:$0xff]  }
 0x113   :  { %v5025_v51 = vld [vmem:[#allocation5 + $0x4c0] ss:$20 sps:$4 sm:$0xff]  }
 0x115   :  { %1834 = vmatpush1.bf16.msra.mxu0 %v4938_v52  ;;  %1998 = vmatpush1.bf16.msra.mxu1 %v4941_v53  ;;  %v4999_v52 = vld [vmem:[#allocation5 + $0x100] ss:$20 sps:$4 sm:$0xff]  }
 0x116   :  { %1835 = vmatprep.subr.bf16.mxu0 %v4946_v54  ;;  %1999 = vmatprep.subr.bf16.mxu1 %v4949_v55  ;;  %v5027_v53 = vld [vmem:[#allocation5 + $0x380] ss:$20 sps:$4 sm:$0xff]   ;;  %v5000_v54 = vld [vmem:[#allocation5 + $0x268] ss:$20 sps:$4 sm:$0xff]  }
 0x117   :  { %v5029_v55 = vld [vmem:[#allocation5 + $0x4e8] ss:$20 sps:$4 sm:$0xff]  }
 0x119   :  { %1836 = vmatpush1.bf16.msra.mxu0 %v4944_v56  ;;  %2000 = vmatpush1.bf16.msra.mxu1 %v4947_v57  ;;  %v5001_v56 = vld [vmem:[#allocation5 + $0x128] ss:$20 sps:$4 sm:$0xff]  }
 0x11a   :  { %1837 = vmatprep.subr.bf16.mxu0 %v4952_v58  ;;  %2001 = vmatprep.subr.bf16.mxu1 %v4955_v59  ;;  %v5031_v57 = vld [vmem:[#allocation5 + $0x3a8] ss:$20 sps:$4 sm:$0xff]   ;;  %v5004_v58 = vld [vmem:[#allocation5 + $0x650] ss:$20 sps:$4 sm:$0xff]  }
 0x11b   :  { %v5006_v59 = vld [vmem:[#allocation5 + $0x510] ss:$20 sps:$4 sm:$0xff]  }
 0x11d   :  { %1838 = vmatpush1.bf16.msra.mxu0 %v4950_v60  ;;  %2002 = vmatpush1.bf16.msra.mxu1 %v4953_v61  ;;  %v5008_v60 = vld [vmem:[#allocation5 + $0x678] ss:$20 sps:$4 sm:$0xff]   ;;  %v5034_v61 = vld [vmem:[#allocation5 + $0x790] ss:$20 sps:$4 sm:$0xff]  }
 0x11e   :  { %1839 = vmatprep.subr.bf16.mxu0 %v4958_v62  ;;  %2003 = vmatprep.subr.bf16.mxu1 %v4961_v63  ;;  %v5037_v62 = vld [vmem:[#allocation7 + $0x4] ss:$12 sps:$4 sm:$0xff]   ;;  %v5470_v63 = vmov 0.0  }
 0x121   :  { %1840 = vmatpush1.bf16.msra.mxu0 %v4956_v0  ;;  %2004 = vmatpush1.bf16.msra.mxu1 %v4959_v1  ;;  %v5010_v0 = vld [vmem:[#allocation5 + $0x538] ss:$20 sps:$4 sm:$0xff]   ;;  %v5012_v1 = vld [vmem:[#allocation5 + $0x6a0] ss:$20 sps:$4 sm:$0xff]  }
 0x122   :  { %1841 = vmatprep.subr.bf16.mxu0 %v4964_v2  ;;  %2005 = vmatprep.subr.bf16.mxu1 %v4967_v3  ;;  %v5014_v2 = vld [vmem:[#allocation5 + $0x560] ss:$20 sps:$4 sm:$0xff]  }
 0x123   :  { %v5035_v3 = vld [vmem:[#allocation7] ss:$12 sps:$4 sm:$0xff]  }
 0x125   :  { %1842 = vmatpush1.bf16.msra.mxu0 %v4962_v4  ;;  %2006 = vmatpush1.bf16.msra.mxu1 %v4965_v6  ;;  %v5016_v4 = vld [vmem:[#allocation5 + $0x6c8] ss:$20 sps:$4 sm:$0xff]   ;;  %v5040_v6 = vld [vmem:[#allocation7 + $0x1c] ss:$12 sps:$4 sm:$0xff]  }
 0x126   :  { %1843 = vmatprep.subr.bf16.mxu0 %v4970_v7  ;;  %2007 = vmatprep.subr.bf16.mxu1 %v4973_v8  ;;  %v5038_v7 = vld [vmem:[#allocation7 + $0x18] ss:$12 sps:$4 sm:$0xff]   ;;  %v5020_v8 = vld [vmem:[#allocation5 + $0x6f0] ss:$20 sps:$4 sm:$0xff]  }
 0x129   :  { %1844 = vmatpush1.bf16.msra.mxu0 %v4968_v9  ;;  %2008 = vmatpush1.bf16.msra.mxu1 %v4971_v10  ;;  %v5041_v9 = vld [vmem:[#allocation7 + $0x30] ss:$12 sps:$4 sm:$0xff]  }
 0x12a   :  { %1845 = vmatprep.subr.bf16.mxu0 %v4976_v11  ;;  %2009 = vmatprep.subr.bf16.mxu1 %v4979_v13  ;;  %v5024_v10 = vld [vmem:[#allocation5 + $0x718] ss:$20 sps:$4 sm:$0xff]   ;;  %v5046_v11 = vld [vmem:[#allocation7 + $0x4c] ss:$12 sps:$4 sm:$0xff]  }
 0x12b   :  { %v5026_v13 = vld [vmem:[#allocation5 + $0x5d8] ss:$20 sps:$4 sm:$0xff]  }
 0x12d   :  { %1846 = vmatpush1.bf16.msra.mxu0 %v4974_v14  ;;  %2010 = vmatpush1.bf16.msra.mxu1 %v4977_v15  ;;  %v5044_v14 = vld [vmem:[#allocation7 + $0x48] ss:$12 sps:$4 sm:$0xff]   ;;  %v5028_v15 = vld [vmem:[#allocation5 + $0x740] ss:$20 sps:$4 sm:$0xff]  }
 0x12e   :  { %1856 = vmatprep.subr.bf16.mxu0 %v4982_v18  ;;  %2020 = vmatprep.subr.bf16.mxu1 %v4985_v19  ;;  %v5030_v18 = vld [vmem:[#allocation5 + $0x600] ss:$20 sps:$4 sm:$0xff]  }
 0x12f   :  { %v5047_v19 = vld [vmem:[#allocation7 + $0x60] ss:$12 sps:$4 sm:$0xff]  }
 0x130   :  { %1848 = vmatmul.mubr.bf16.vlgmr.msra.gmra.mrb[0].mxu0 %v5632_v20  ;;  %2012 = vmatmul.mubr.bf16.vlgmr.msra.gmra.mrb[0].mxu1 %v5632_v20 }
 0x131   :  { %1857 = vmatpush1.bf16.msra.mxu0 %v4980_v21  ;;  %2021 = vmatpush1.bf16.msra.mxu1 %v4983_v22  ;;  %v5032_v21 = vld [vmem:[#allocation5 + $0x768] ss:$20 sps:$4 sm:$0xff]   ;;  %v5052_v22 = vld [vmem:[#allocation7 + $0x7c] ss:$12 sps:$4 sm:$0xff]  }
 0x132   :  { %1888 = vmatprep.mubr.bf16.mxu0 %v5469_v25  ;;  %2052 = vmatprep.mubr.bf16.mxu1 %v5469_v25 }
 0x133   :  { %4432 = vmatprep.subr.bf16.mxu0 %v4986_v23  ;;  %4454 = vmatprep.subr.bf16.mxu1 %v5002_v24  ;;  %v5033_v23 = vld [vmem:[#allocation5 + $0x628] ss:$20 sps:$4 sm:$0xff]   ;;  %v5050_v24 = vld [vmem:[#allocation7 + $0x78] ss:$12 sps:$4 sm:$0xff]  }
 0x13c   :  { %4235 = vmatmul.mubr.msk.bf16.vlgmr.msra.gmra.mrb[0].mxu0 %vm1729_vm0, %v5638_v27  ;;  %4236 = vmatmul.mubr.msk.bf16.vlgmr.msra.gmra.mrb[0].mxu1 %vm1729_vm0, %v5638_v27 }
 0x13d   :  { %4433 = vmatpush3.bf16.msra.mxu0 %v4987_v28  ;;  %4455 = vmatpush3.bf16.msra.mxu1 %v5003_v29  ;;  %v5053_v28 = vld [vmem:[#allocation7 + $0x90] ss:$12 sps:$4 sm:$0xff]   ;;  %v5063_v29 = vld [vmem:[#allocation7 + $0x8] ss:$12 sps:$4 sm:$0xff]  }
 0x13e   :  { %4434 = vmatprep.subr.bf16.mxu0 %v4988_v30  ;;  %2093 = vmatprep.mubr.bf16.mxu0 %v5612_v48  ;;  %v4995_v48 = vld [vmem:[#allocation5 + $0xb0] ss:$20 sps:$4 sm:$0xff]   ;;  %v5058_v30 = vld [vmem:[#allocation7 + $0xac] ss:$12 sps:$4 sm:$0xff]  }
 0x13f   :  { %4456 = vmatprep.subr.bf16.mxu1 %v5005_v31  ;;  %2133 = vmatprep.mubr.bf16.mxu1 %v5620_v32  ;;  %v4997_v32 = vld [vmem:[#allocation5 + $0xd8] ss:$20 sps:$4 sm:$0xff]   ;;  %v5067_v31 = vld [vmem:[#allocation7 + $0xe0] ss:$12 sps:$4 sm:$0xff]  }
 0x141   :  { %4435 = vmatpush3.bf16.msra.mxu0 %v4989_v33  ;;  %4457 = vmatpush3.bf16.msra.mxu1 %v5007_v35  ;;  %v5056_v33 = vld [vmem:[#allocation7 + $0xa8] ss:$12 sps:$4 sm:$0xff]   ;;  %v5061_v35 = vld [vmem:[#allocation7 + $0xc4] ss:$12 sps:$4 sm:$0xff]  }
 0x142   :  { %4436 = vmatprep.subr.bf16.mxu0 %v4990_v34  ;;  %4458 = vmatprep.subr.bf16.mxu1 %v5009_v36  ;;  %v5068_v34 = vld [vmem:[#allocation7 + $0x20] ss:$12 sps:$4 sm:$0xff]   ;;  %v5072_v36 = vld [vmem:[#allocation7 + $0xf8] ss:$12 sps:$4 sm:$0xff]  }
 0x145   :  { %4437 = vmatpush3.bf16.msra.mxu0 %v4991_v37  ;;  %4459 = vmatpush3.bf16.msra.mxu1 %v5011_v39  ;;  %v5059_v37 = vld [vmem:[#allocation7 + $0xc0] ss:$12 sps:$4 sm:$0xff]   ;;  %v5066_v39 = vld [vmem:[#allocation7 + $0xdc] ss:$12 sps:$4 sm:$0xff]  }
 0x146   :  { %4438 = vmatprep.subr.bf16.mxu0 %v4992_v38  ;;  %4460 = vmatprep.subr.bf16.mxu1 %v5013_v40  ;;  %v5073_v38 = vld [vmem:[#allocation7 + $0x38] ss:$12 sps:$4 sm:$0xff]   ;;  %v5077_v40 = vld [vmem:[#allocation7 + $0x110] ss:$12 sps:$4 sm:$0xff]  }
 0x149   :  { %4439 = vmatpush3.bf16.msra.mxu0 %v4993_v41  ;;  %4461 = vmatpush3.bf16.msra.mxu1 %v5015_v42  ;;  %v5064_v41 = vld [vmem:[#allocation7 + $0xd8] ss:$12 sps:$4 sm:$0xff]   ;;  %v5078_v42 = vld [vmem:[#allocation7 + $0x50] ss:$12 sps:$4 sm:$0xff]  }
 0x14a   :  { %4440 = vmatprep.subr.bf16.mxu0 %v4994_v43  ;;  %4462 = vmatprep.subr.bf16.mxu1 %v5017_v44  ;;  %v5082_v43 = vld [vmem:[#allocation7 + $0x128] ss:$12 sps:$4 sm:$0xff]   ;;  %v5069_v44 = vld [vmem:[#allocation7 + $0xf0] ss:$12 sps:$4 sm:$0xff]  }
 0x14d   :  { %4441 = vmatpush3.bf16.msra.mxu0 %v4995_v48  ;;  %4463 = vmatpush3.bf16.msra.mxu1 %v5019_v45  ;;  %v5083_v48 = vld [vmem:[#allocation7 + $0x68] ss:$12 sps:$4 sm:$0xff]   ;;  %v5076_v45 = vld [vmem:[#allocation7 + $0x10c] ss:$12 sps:$4 sm:$0xff]  }
 0x14e   :  { %4442 = vmatprep.subr.bf16.mxu0 %v4996_v46  ;;  %4464 = vmatprep.subr.bf16.mxu1 %v5021_v47  ;;  %v5087_v46 = vld [vmem:[#allocation7 + $0x140] ss:$12 sps:$4 sm:$0xff]   ;;  %v5074_v47 = vld [vmem:[#allocation7 + $0x108] ss:$12 sps:$4 sm:$0xff]  }
 0x151   :  { %4443 = vmatpush3.bf16.msra.mxu0 %v4997_v32  ;;  %4465 = vmatpush3.bf16.msra.mxu1 %v5023_v49  ;;  %v5088_v32 = vld [vmem:[#allocation7 + $0x80] ss:$12 sps:$4 sm:$0xff]   ;;  %v5081_v49 = vld [vmem:[#allocation7 + $0x124] ss:$12 sps:$4 sm:$0xff]  }
 0x152   :  { %4444 = vmatprep.subr.bf16.mxu0 %v4998_v50  ;;  %4466 = vmatprep.subr.bf16.mxu1 %v5025_v51  ;;  %v5092_v50 = vld [vmem:[#allocation7 + $0x158] ss:$12 sps:$4 sm:$0xff]   ;;  %v5079_v51 = vld [vmem:[#allocation7 + $0x120] ss:$12 sps:$4 sm:$0xff]  }
 0x155   :  { %4445 = vmatpush3.bf16.msra.mxu0 %v4999_v52  ;;  %4467 = vmatpush3.bf16.msra.mxu1 %v5027_v53  ;;  %v5093_v52 = vld [vmem:[#allocation7 + $0x98] ss:$12 sps:$4 sm:$0xff]   ;;  %v5086_v53 = vld [vmem:[#allocation7 + $0x13c] ss:$12 sps:$4 sm:$0xff]  }
 0x156   :  { %4446 = vmatprep.subr.bf16.mxu0 %v5000_v54  ;;  %4468 = vmatprep.subr.bf16.mxu1 %v5029_v55  ;;  %v5097_v54 = vld [vmem:[#allocation7 + $0x170] ss:$12 sps:$4 sm:$0xff]   ;;  %v5084_v55 = vld [vmem:[#allocation7 + $0x138] ss:$12 sps:$4 sm:$0xff]  }
 0x159   :  { %4447 = vmatpush3.bf16.msra.mxu0 %v5001_v56  ;;  %4469 = vmatpush3.bf16.msra.mxu1 %v5031_v57  ;;  %v5098_v56 = vld [vmem:[#allocation7 + $0xb0] ss:$12 sps:$4 sm:$0xff]   ;;  %v5091_v57 = vld [vmem:[#allocation7 + $0x154] ss:$12 sps:$4 sm:$0xff]  }
 0x15a   :  { %4476 = vmatprep.subr.bf16.mxu0 %v5004_v58  ;;  %4584 = vmatprep.subr.bf16.mxu1 %v5470_v63  ;;  %v5102_v58 = vld [vmem:[#allocation7 + $0x248] ss:$12 sps:$4 sm:$0xff]  }
 0x15c   :  { %2094 = vmatmul.mubr.bf16.vlgmr.msra.gmra.mrb[4].mxu0 %v5616_v5  ;;  %2134 = vmatmul.mubr.bf16.vlgmr.msra.gmra.mrb[4].mxu1 %v5624_v12  ;;  %v5018_v5 = vld [vmem:[#allocation5 + $0x588] ss:$20 sps:$4 sm:$0xff]  }
 0x15d   :  { %4477 = vmatpush3.bf16.msra.mxu0 %v5006_v59  ;;  %2173 = vmatprep.mubr.bf16.mxu0 %v5626_v17  ;;  %v5043_v12 = vld [vmem:[#allocation7 + $0x34] ss:$12 sps:$4 sm:$0xff]   ;;  %v5022_v17 = vld [vmem:[#allocation5 + $0x5b0] ss:$20 sps:$4 sm:$0xff]  }
 0x15e   :  { %4478 = vmatprep.subr.bf16.mxu0 %v5008_v60  ;;  %4585 = vmatpush3.bf16.msra.mxu1 %v5034_v61  ;;  %v5089_v59 = vld [vmem:[#allocation7 + $0x150] ss:$12 sps:$4 sm:$0xff]   ;;  %v5096_v60 = vld [vmem:[#allocation7 + $0x16c] ss:$12 sps:$4 sm:$0xff]   ;;  %v5094_v61 = vld [vmem:[#allocation7 + $0x168] ss:$12 sps:$4 sm:$0xff]  }
 0x15f   :  { %4586 = vmatprep.mubr.msk.bf16.mxu1 %vm5471_vm1, %v5470_v63  ;;  %3048 = vmatprep.subr.bf16.mxu1 %v5037_v62  ;;  %v5101_v62 = vld [vmem:[#allocation7 + $0x184] ss:$12 sps:$4 sm:$0xff]  }
 0x161   :  { %4479 = vmatpush3.bf16.msra.mxu0 %v5010_v0  ;;  %v430_v0 = vlaneseq }
 0x162   :  { %4480 = vmatprep.subr.bf16.mxu0 %v5012_v1 }
 0x163   :  { %v5655_v1 = vshrl.u32 %v430_v0, 7 }
 0x164   :  { %4587 = vmatmul.mubr.msk.bf16.vlgmr.msra.gmra.mrb[8].mxu1 %vm1729_vm0, %v5638_v27  ;;  %v5062_v27 = vld [vmem:[#allocation7 + $0xc8] ss:$12 sps:$4 sm:$0xff]  }
 0x165   :  { %4481 = vmatpush3.bf16.msra.mxu0 %v5014_v2  ;;  %3049 = vmatpush1.bf16.msra.mxu1 %v5035_v3  ;;  %v5658_v2 = vsub.s32 0, %v5655_v1  ;;  %v5663_v3 = vld [vmem:[%s5744_s2] sm:$0x1f] }
 0x166   :  { %4482 = vmatprep.subr.bf16.mxu0 %v5016_v4  ;;  %3050 = vmatprep.subr.bf16.mxu1 %v5040_v6  ;;  %v5666_v4 = vsub.s32 1, %v5655_v1  ;;  %v444_v6 = vsub.s32 3, %v5655_v1 }
 0x169   :  { %4483 = vmatpush3.bf16.msra.mxu0 %v5018_v5  ;;  %3051 = vmatpush1.bf16.msra.mxu1 %v5038_v7  ;;  %v433_v5 = vrot.slane %v5663_v3, %v5658_v2  ;;  %v437_v7 = vrot.slane %v5663_v3, %v5666_v4 }
 0x16a   :  { %4484 = vmatprep.subr.bf16.mxu0 %v5020_v8  ;;  %3052 = vmatprep.subr.bf16.mxu1 %v5043_v12  ;;  %v445_v8 = vrot.slane %v5663_v3, %v444_v6  ;;  %v5134_v6 = vld [vmem:[#allocation7 + $0x228] ss:$12 sps:$4 sm:$0xff]  }
 0x16d   :  { %4485 = vmatpush3.bf16.msra.mxu0 %v5022_v17  ;;  %3053 = vmatpush1.bf16.msra.mxu1 %v5041_v9 }
 0x16e   :  { %4486 = vmatprep.subr.bf16.mxu0 %v5024_v10  ;;  %3054 = vmatprep.subr.bf16.mxu1 %v5046_v11 }
 0x171   :  { %4487 = vmatpush3.bf16.msra.mxu0 %v5026_v13  ;;  %3055 = vmatpush1.bf16.msra.mxu1 %v5044_v14 }
 0x172   :  { %4488 = vmatprep.subr.bf16.mxu0 %v5028_v15  ;;  %3056 = vmatprep.subr.bf16.mxu1 %v5049_v16 }
 0x175   :  { %4489 = vmatpush3.bf16.msra.mxu0 %v5030_v18  ;;  %3057 = vmatpush1.bf16.msra.mxu1 %v5047_v19 }
 0x176   :  { %4490 = vmatprep.subr.bf16.mxu0 %v5032_v21  ;;  %3058 = vmatprep.subr.bf16.mxu1 %v5052_v22 }
 0x179   :  { %4491 = vmatpush3.bf16.msra.mxu0 %v5033_v23  ;;  %3059 = vmatpush1.bf16.msra.mxu1 %v5050_v24 }
 0x17a   :  { %3060 = vmatprep.subr.bf16.mxu1 %v5055_v26  ;;  %4500 = vmatprep.subr.bf16.mxu0 %v5062_v27  ;;  %v5099_v26 = vld [vmem:[#allocation7 + $0x180] ss:$12 sps:$4 sm:$0xff]   ;;  %v5103_v27 = vld [vmem:[#allocation7 + $0x188] ss:$12 sps:$4 sm:$0xff]  }
 0x17c   :  { %2174 = vmatmul.mubr.bf16.vlgmr.msra.gmra.mrb[8].mxu0 %v5632_v20  ;;  %v5071_v20 = vld [vmem:[#allocation7 + $0xf4] ss:$12 sps:$4 sm:$0xff]  }
 0x17d   :  { %3061 = vmatpush1.bf16.msra.mxu1 %v5053_v28  ;;  %4501 = vmatpush3.bf16.msra.mxu0 %v5063_v29  ;;  %v5106_v29 = vld [vmem:[#allocation7 + $0x19c] ss:$12 sps:$4 sm:$0xff]  }
 0x17e   :  { %3062 = vmatprep.subr.bf16.mxu1 %v5058_v30  ;;  %4502 = vmatprep.subr.bf16.mxu0 %v5067_v31  ;;  %v5107_v30 = vld [vmem:[#allocation7 + $0x260] ss:$12 sps:$4 sm:$0xff]  }
 0x181   :  { %3063 = vmatpush1.bf16.msra.mxu1 %v5056_v33  ;;  %4503 = vmatpush3.bf16.msra.mxu0 %v5068_v34  ;;  %v5104_v33 = vld [vmem:[#allocation7 + $0x198] ss:$12 sps:$4 sm:$0xff]   ;;  %v5108_v34 = vld [vmem:[#allocation7 + $0x1a0] ss:$12 sps:$4 sm:$0xff]  }
 0x182   :  { %3064 = vmatprep.subr.bf16.mxu1 %v5061_v35  ;;  %4504 = vmatprep.subr.bf16.mxu0 %v5072_v36  ;;  %v5111_v35 = vld [vmem:[#allocation7 + $0x1b4] ss:$12 sps:$4 sm:$0xff]   ;;  %v5112_v36 = vld [vmem:[#allocation7 + $0x278] ss:$12 sps:$4 sm:$0xff]  }
 0x185   :  { %3065 = vmatpush1.bf16.msra.mxu1 %v5059_v37  ;;  %4505 = vmatpush3.bf16.msra.mxu0 %v5073_v38  ;;  %v5109_v37 = vld [vmem:[#allocation7 + $0x1b0] ss:$12 sps:$4 sm:$0xff]   ;;  %v5113_v38 = vld [vmem:[#allocation7 + $0x1b8] ss:$12 sps:$4 sm:$0xff]  }
 0x186   :  { %3066 = vmatprep.subr.bf16.mxu1 %v5066_v39  ;;  %4506 = vmatprep.subr.bf16.mxu0 %v5077_v40  ;;  %v5116_v39 = vld [vmem:[#allocation7 + $0x1cc] ss:$12 sps:$4 sm:$0xff]   ;;  %v5117_v40 = vld [vmem:[#allocation7 + $0x290] ss:$12 sps:$4 sm:$0xff]  }
 0x189   :  { %3067 = vmatpush1.bf16.msra.mxu1 %v5064_v41  ;;  %4507 = vmatpush3.bf16.msra.mxu0 %v5078_v42  ;;  %v5114_v41 = vld [vmem:[#allocation7 + $0x1c8] ss:$12 sps:$4 sm:$0xff]   ;;  %v5118_v42 = vld [vmem:[#allocation7 + $0x1d0] ss:$12 sps:$4 sm:$0xff]  }
 0x18a   :  { %3068 = vmatprep.subr.bf16.mxu1 %v5071_v20  ;;  %4508 = vmatprep.subr.bf16.mxu0 %v5082_v43  ;;  %v5121_v20 = vld [vmem:[#allocation7 + $0x1e4] ss:$12 sps:$4 sm:$0xff]   ;;  %v5122_v43 = vld [vmem:[#allocation7 + $0x2a8] ss:$12 sps:$4 sm:$0xff]  }
 0x18d   :  { %3069 = vmatpush1.bf16.msra.mxu1 %v5069_v44  ;;  %4509 = vmatpush3.bf16.msra.mxu0 %v5083_v48  ;;  %v5119_v44 = vld [vmem:[#allocation7 + $0x1e0] ss:$12 sps:$4 sm:$0xff]   ;;  %v5123_v48 = vld [vmem:[#allocation7 + $0x1e8] ss:$12 sps:$4 sm:$0xff]  }
 0x18e   :  { %3070 = vmatprep.subr.bf16.mxu1 %v5076_v45  ;;  %4510 = vmatprep.subr.bf16.mxu0 %v5087_v46  ;;  %v440_v45 = vsub.s32 2, %v5655_v1  ;;  %v5126_v46 = vld [vmem:[#allocation7 + $0x1fc] ss:$12 sps:$4 sm:$0xff]  }
 0x191   :  { %3071 = vmatpush1.bf16.msra.mxu1 %v5074_v47  ;;  %4511 = vmatpush3.bf16.msra.mxu0 %v5088_v32  ;;  %v5127_v47 = vld [vmem:[#allocation7 + $0x2c0] ss:$12 sps:$4 sm:$0xff]   ;;  %v5124_v32 = vld [vmem:[#allocation7 + $0x1f8] ss:$12 sps:$4 sm:$0xff]  }
 0x192   :  { %3072 = vmatprep.subr.bf16.mxu1 %v5081_v49  ;;  %4512 = vmatprep.subr.bf16.mxu0 %v5092_v50  ;;  %v5128_v49 = vld [vmem:[#allocation7 + $0x200] ss:$12 sps:$4 sm:$0xff]   ;;  %v441_v50 = vrot.slane %v5663_v3, %v440_v45 }
 0x195   :  { %3073 = vmatpush1.bf16.msra.mxu1 %v5079_v51  ;;  %4513 = vmatpush3.bf16.msra.mxu0 %v5093_v52  ;;  %v5131_v51 = vld [vmem:[#allocation7 + $0x214] ss:$12 sps:$4 sm:$0xff]   ;;  %v5132_v52 = vld [vmem:[#allocation7 + $0x2d8] ss:$12 sps:$4 sm:$0xff]  }
 0x196   :  { %3074 = vmatprep.subr.bf16.mxu1 %v5086_v53  ;;  %4514 = vmatprep.subr.bf16.mxu0 %v5097_v54  ;;  %v448_v53 = vsub.s32 4, %v5655_v1  ;;  %v5129_v54 = vld [vmem:[#allocation7 + $0x210] ss:$12 sps:$4 sm:$0xff]  }
 0x199   :  { %3075 = vmatpush1.bf16.msra.mxu1 %v5084_v55  ;;  %4515 = vmatpush3.bf16.msra.mxu0 %v5098_v56  ;;  %v5133_v55 = vld [vmem:[#allocation7 + $0x218] ss:$12 sps:$4 sm:$0xff]  }
 0x19a   :  { %3076 = vmatprep.subr.bf16.mxu1 %v5091_v57  ;;  %4522 = vmatprep.subr.bf16.mxu0 %v5102_v58  ;;  %v5136_v57 = vld [vmem:[#allocation7 + $0x22c] ss:$12 sps:$4 sm:$0xff]   ;;  %v5137_v58 = vld [vmem:[#allocation7 + $0x2f0] ss:$12 sps:$4 sm:$0xff]  }
 0x19d   :  { %3077 = vmatpush1.bf16.msra.mxu1 %v5089_v59 }
 0x19e   :  { %3078 = vmatprep.subr.bf16.mxu1 %v5096_v60  ;;  %v449_v60 = vrot.slane %v5663_v3, %v448_v53  ;;  %v5139_v3 = vld [vmem:[#allocation7 + $0x240] ss:$12 sps:$4 sm:$0xff]  }
 0x1a1   :  { %3079 = vmatpush1.bf16.msra.mxu1 %v5094_v61 }
 0x1a2   :  { %3089 = vmatprep.subr.bf16.mxu1 %v5101_v62 }
 0x20f   :  { %v1890_v12 = vpop.f32.mrb[0].mxu0  ;;  %v5674_v17 = vpop.f32.mrb[0].mxu1 }
 0x210   :  { %v4630_v9 = vadd.f32 %v1890_v12, %v433_v5  ;;  %v1892_v10 = vpop.f32.mrb[1].mxu0  ;;  %v2056_v11 = vpop.f32.mrb[1].mxu1  ;;  %v4632_v56 = vadd.f32 %v5674_v17, %v441_v50  ;;  %v5138_v5 = vld [vmem:[#allocation7 + $0x230] ss:$12 sps:$4 sm:$0xff]  }
 0x211   :  { %v4631_v13 = vadd.f32 %v1892_v10, %v437_v7  ;;  %v4633_v14 = vadd.f32 %v2056_v11, %v445_v8  ;;  %v1894_v15 = vpop.f32.mrb[2].mxu0  ;;  %v2058_v16 = vpop.f32.mrb[2].mxu1  ;;  %v5141_v17 = vld [vmem:[#allocation7 + $0x244] ss:$12 sps:$4 sm:$0xff]  }
 0x212   :  { %v2221_v18 = vmax.f32 %v4630_v9, 0.0  ;;  %v1895_v19 = vpop.f32.mrb[3].mxu0  ;;  %v2059_v21 = vpop.f32.mrb[3].mxu1  ;;  %v2223_v10 = vmax.f32 %v4632_v56, 0.0  ;;  %v5145_v15 = vld [vmem:[#allocation7 + $0x308] ss:$12 sps:$4 sm:$0xff]  }
 0x213   :  { %v2222_v22 = vmax.f32 %v4631_v13, 0.0  ;;  %v2224_v23 = vmax.f32 %v4633_v14, 0.0  ;;  %v5144_v19 = vld [vmem:[#allocation7 + $0x25c] ss:$12 sps:$4 sm:$0xff]   ;;  %v5172_v50 = vld [vmem:[#allocation7 + $0x304] ss:$12 sps:$4 sm:$0xff]  }
 0x214   :  { %v2226_v28 = vpack.c.bf16 %v2221_v18, %v2221_v18  ;;  %v5685_v18 = vpack.c.bf16 %v2223_v10, %v2223_v10  ;;  %v5192_v10 = vld [vmem:[#allocation7 + $0x3a8] ss:$12 sps:$4 sm:$0xff]  }
 0x215   :  { %v2227_v24 = vpack.c.bf16 %v2222_v22, %v2222_v22  ;;  %v2229_v31 = vpack.c.bf16 %v2224_v23, %v2224_v23  ;;  %v5142_v23 = vld [vmem:[#allocation7 + $0x258] ss:$12 sps:$4 sm:$0xff]  }
 0x217   :  { %3080 = vmatprep.mubr.bf16.mxu1 %v2227_v24  ;;  %3203 = vmatprep.mubr.bf16.mxu0 %v2227_v24  ;;  %v5149_v24 = vld [vmem:[#allocation7 + $0x320] ss:$12 sps:$4 sm:$0xff]  }
 0x218   :  { %3081 = vmatmul.mubr.bf16.vlgmr.msra.gmra.mrb[12].mxu1 %v2226_v28  ;;  %3204 = vmatmul.mubr.bf16.vlgmr.msra.gmra.mrb[12].mxu0 %v2226_v28 }
 0x219   :  { %3090 = vmatpush1.bf16.msra.mxu1 %v5099_v26  ;;  %4523 = vmatpush3.bf16.msra.mxu0 %v5103_v27  ;;  %v5148_v27 = vld [vmem:[#allocation7 + $0x274] ss:$12 sps:$4 sm:$0xff]  }
 0x21a   :  { %3121 = vmatprep.mubr.bf16.mxu1 %v2229_v31  ;;  %3243 = vmatprep.mubr.bf16.mxu0 %v2229_v31  ;;  %v5152_v31 = vld [vmem:[#allocation7 + $0x28c] ss:$12 sps:$4 sm:$0xff]  }
 0x21b   :  { %3091 = vmatprep.subr.bf16.mxu1 %v5106_v29  ;;  %4524 = vmatprep.subr.bf16.mxu0 %v5107_v30  ;;  %v5146_v29 = vld [vmem:[#allocation7 + $0x270] ss:$12 sps:$4 sm:$0xff]   ;;  %v5153_v30 = vld [vmem:[#allocation7 + $0x338] ss:$12 sps:$4 sm:$0xff]  }
 0x21d   :  { %3092 = vmatpush1.bf16.msra.mxu1 %v5104_v33  ;;  %4525 = vmatpush3.bf16.msra.mxu0 %v5108_v34  ;;  %v5150_v33 = vld [vmem:[#allocation7 + $0x288] ss:$12 sps:$4 sm:$0xff]   ;;  %v5157_v34 = vld [vmem:[#allocation7 + $0x350] ss:$12 sps:$4 sm:$0xff]  }
 0x21e   :  { %3093 = vmatprep.subr.bf16.mxu1 %v5111_v35  ;;  %4526 = vmatprep.subr.bf16.mxu0 %v5112_v36  ;;  %v5156_v35 = vld [vmem:[#allocation7 + $0x2a4] ss:$12 sps:$4 sm:$0xff]   ;;  %v5154_v36 = vld [vmem:[#allocation7 + $0x2a0] ss:$12 sps:$4 sm:$0xff]  }
 0x221   :  { %3094 = vmatpush1.bf16.msra.mxu1 %v5109_v37  ;;  %4527 = vmatpush3.bf16.msra.mxu0 %v5113_v38  ;;  %v5161_v37 = vld [vmem:[#allocation7 + $0x368] ss:$12 sps:$4 sm:$0xff]  }
 0x222   :  { %3095 = vmatprep.subr.bf16.mxu1 %v5116_v39  ;;  %4528 = vmatprep.subr.bf16.mxu0 %v5117_v40  ;;  %v5160_v38 = vld [vmem:[#allocation7 + $0x2bc] ss:$12 sps:$4 sm:$0xff]   ;;  %v5158_v39 = vld [vmem:[#allocation7 + $0x2b8] ss:$12 sps:$4 sm:$0xff]   ;;  %v5165_v40 = vld [vmem:[#allocation7 + $0x380] ss:$12 sps:$4 sm:$0xff]  }
 0x225   :  { %3096 = vmatpush1.bf16.msra.mxu1 %v5114_v41  ;;  %4529 = vmatpush3.bf16.msra.mxu0 %v5118_v42  ;;  %v5164_v41 = vld [vmem:[#allocation7 + $0x2d4] ss:$12 sps:$4 sm:$0xff]   ;;  %v5162_v42 = vld [vmem:[#allocation7 + $0x2d0] ss:$12 sps:$4 sm:$0xff]  }
 0x226   :  { %3097 = vmatprep.subr.bf16.mxu1 %v5121_v20  ;;  %4530 = vmatprep.subr.bf16.mxu0 %v5122_v43  ;;  %v5169_v20 = vld [vmem:[#allocation7 + $0x398] ss:$12 sps:$4 sm:$0xff]  }
 0x227   :  { %v5168_v43 = vld [vmem:[#allocation7 + $0x2ec] ss:$12 sps:$4 sm:$0xff]  }
 0x229   :  { %3098 = vmatpush1.bf16.msra.mxu1 %v5119_v44  ;;  %4531 = vmatpush3.bf16.msra.mxu0 %v5123_v48 }
 0x22a   :  { %3099 = vmatprep.subr.bf16.mxu1 %v5126_v46  ;;  %4532 = vmatprep.subr.bf16.mxu0 %v5127_v47  ;;  %v5166_v47 = vld [vmem:[#allocation7 + $0x2e8] ss:$12 sps:$4 sm:$0xff]  }
 0x22d   :  { %3100 = vmatpush1.bf16.msra.mxu1 %v5124_v32  ;;  %4533 = vmatpush3.bf16.msra.mxu0 %v5128_v49  ;;  %v5173_v32 = vld [vmem:[#allocation7 + $0x3b0] ss:$12 sps:$4 sm:$0xff]  }
 0x22e   :  { %3101 = vmatprep.subr.bf16.mxu1 %v5131_v51  ;;  %4534 = vmatprep.subr.bf16.mxu0 %v5132_v52 }
 0x22f   :  { %v4448_v59 = vpop.f32.mrb[4].mxu0  ;;  %v4470_v61 = vpop.f32.mrb[4].mxu1 }
 0x230   :  { %v4449_v62 = vpop.f32.mrb[5].mxu0  ;;  %v4471_v0 = vpop.f32.mrb[5].mxu1 }
 0x231   :  { %3102 = vmatpush1.bf16.msra.mxu1 %v5129_v54  ;;  %4535 = vmatpush3.bf16.msra.mxu0 %v5133_v55  ;;  %v4450_v7 = vadd.f32 %v4449_v62, %v4448_v59  ;;  %v4451_v8 = vpop.f32.mrb[6].mxu0  ;;  %v4472_v12 = vadd.f32 %v4471_v0, %v4470_v61  ;;  %v4473_v9 = vpop.f32.mrb[6].mxu1  ;;  %v5170_v54 = vld [vmem:[#allocation7 + $0x300] ss:$12 sps:$4 sm:$0xff]   ;;  %v5176_v55 = vld [vmem:[#allocation7 + $0x31c] ss:$12 sps:$4 sm:$0xff]  }
 0x232   :  { %3103 = vmatprep.subr.bf16.mxu1 %v5136_v57  ;;  %4536 = vmatprep.subr.bf16.mxu0 %v5137_v58  ;;  %v4452_v11 = vpop.f32.mrb[7].mxu0  ;;  %v4474_v13 = vpop.f32.mrb[7].mxu1  ;;  %v5174_v58 = vld [vmem:[#allocation7 + $0x318] ss:$12 sps:$4 sm:$0xff]   ;;  %v5179_v59 = vld [vmem:[#allocation7 + $0x334] ss:$12 sps:$4 sm:$0xff]  }
 0x233   :  { %v2096_v14 = vadd.f32 %v4450_v7, %v449_v60  ;;  %v5177_v60 = vld [vmem:[#allocation7 + $0x330] ss:$12 sps:$4 sm:$0xff]   ;;  %v5182_v61 = vld [vmem:[#allocation7 + $0x34c] ss:$12 sps:$4 sm:$0xff]   ;;  %v5180_v62 = vld [vmem:[#allocation7 + $0x348] ss:$12 sps:$4 sm:$0xff]  }
 0x234   :  { %v5185_v0 = vld [vmem:[#allocation7 + $0x364] ss:$12 sps:$4 sm:$0xff]   ;;  %v5191_v8 = vld [vmem:[#allocation7 + $0x394] ss:$12 sps:$4 sm:$0xff]   ;;  %v5194_v9 = vld [vmem:[#allocation7 + $0x3ac] ss:$12 sps:$4 sm:$0xff]  }
 0x235   :  { %3104 = vmatpush1.bf16.msra.mxu1 %v5134_v6  ;;  %4537 = vmatpush3.bf16.msra.mxu0 %v5138_v5  ;;  %v5683_v16 = vadd.f32 %v4472_v12, %v2096_v14  ;;  %v5183_v6 = vld [vmem:[#allocation7 + $0x360] ss:$12 sps:$4 sm:$0xff]   ;;  %v5188_v5 = vld [vmem:[#allocation7 + $0x37c] ss:$12 sps:$4 sm:$0xff]   ;;  %v5186_v7 = vld [vmem:[#allocation7 + $0x378] ss:$12 sps:$4 sm:$0xff]  }
 0x236   :  { %3105 = vmatprep.subr.bf16.mxu1 %v5141_v17  ;;  %4590 = vmatprep.subr.bf16.mxu0 %v5470_v63  ;;  %v5189_v12 = vld [vmem:[#allocation7 + $0x390] ss:$12 sps:$4 sm:$0xff]   ;;  %v5195_v17 = vld [vmem:[#allocation8] ss:$8 sps:$4 sm:$0xff]   ;;  %v5197_v11 = vld [vmem:[#allocation8 + $0x4] ss:$8 sps:$4 sm:$0xff]  }
 0x237   :  { %v2215_v21 = vpop.f32.mrb[8].mxu1  ;;  %v5200_v13 = vld [vmem:[#allocation8 + $0x14] ss:$8 sps:$4 sm:$0xff]   ;;  %v5198_v14 = vld [vmem:[#allocation8 + $0x10] ss:$8 sps:$4 sm:$0xff]  }
 0x238   :  { %3244 = vmatmul.mubr.bf16.vlgmr.msra.gmra.mrb[16].mxu0 %v5685_v18  ;;  %v4588_v22 = vpop.f32.mrb[9].mxu1 }
 0x239   :  { %3106 = vmatpush1.bf16.msra.mxu1 %v5139_v3  ;;  %4591 = vmatpush3.bf16.msra.mxu0 %v5145_v15  ;;  %v2218_v26 = vpop.f32.mrb[10].mxu1  ;;  %v5203_v3 = vld [vmem:[#allocation8 + $0x24] ss:$8 sps:$4 sm:$0xff]   ;;  %v5201_v15 = vld [vmem:[#allocation8 + $0x20] ss:$8 sps:$4 sm:$0xff]  }
 0x23a   :  { %3107 = vmatprep.subr.bf16.mxu1 %v5144_v19  ;;  %4592 = vmatprep.subr.bf16.mxu0 %v5470_v63  ;;  %v4589_v28 = vpop.f32.mrb[11].mxu1  ;;  %v5209_v19 = vld [vmem:[#allocation8 + $0x44] ss:$8 sps:$4 sm:$0xff]   ;;  %v5212_v22 = vld [vmem:[#allocation8 + $0x54] ss:$8 sps:$4 sm:$0xff]  }
 0x23b   :  { %4606 = vmatprep.mubr.msk.bf16.mxu0 %vm5471_vm1, %v5470_v63  ;;  %v5213_v26 = vld [vmem:[#allocation8 + $0x60] ss:$8 sps:$4 sm:$0xff]   ;;  %v5216_v28 = vld [vmem:[#allocation8 + $0x70] ss:$8 sps:$4 sm:$0xff]  }
 0x23d   :  { %3108 = vmatpush1.bf16.msra.mxu1 %v5142_v23  ;;  %4593 = vmatpush3.bf16.msra.mxu0 %v5149_v24  ;;  %v5210_v23 = vld [vmem:[#allocation8 + $0x50] ss:$8 sps:$4 sm:$0xff]   ;;  %v5215_v24 = vld [vmem:[#allocation8 + $0x64] ss:$8 sps:$4 sm:$0xff]  }
 0x23e   :  { %3109 = vmatprep.subr.bf16.mxu1 %v5148_v27  ;;  %4594 = vmatprep.subr.bf16.mxu0 %v5470_v63  ;;  %v5218_v27 = vld [vmem:[#allocation8 + $0x74] ss:$8 sps:$4 sm:$0xff]  }
 0x241   :  { %3110 = vmatpush1.bf16.msra.mxu1 %v5146_v29  ;;  %4595 = vmatpush3.bf16.msra.mxu0 %v5153_v30  ;;  %v5221_v29 = vld [vmem:[#allocation8 + $0x84] ss:$8 sps:$4 sm:$0xff]   ;;  %v5219_v30 = vld [vmem:[#allocation8 + $0x80] ss:$8 sps:$4 sm:$0xff]  }
 0x242   :  { %3111 = vmatprep.subr.bf16.mxu1 %v5152_v31  ;;  %4596 = vmatprep.subr.bf16.mxu0 %v5470_v63  ;;  %v5224_v31 = vld [vmem:[#allocation8 + $0x94] ss:$8 sps:$4 sm:$0xff]  }
 0x245   :  { %3112 = vmatpush1.bf16.msra.mxu1 %v5150_v33  ;;  %4597 = vmatpush3.bf16.msra.mxu0 %v5157_v34  ;;  %v5222_v33 = vld [vmem:[#allocation8 + $0x90] ss:$8 sps:$4 sm:$0xff]   ;;  %v5227_v34 = vld [vmem:[#allocation8 + $0xa4] ss:$8 sps:$4 sm:$0xff]  }
 0x246   :  { %3113 = vmatprep.subr.bf16.mxu1 %v5156_v35  ;;  %4598 = vmatprep.subr.bf16.mxu0 %v5470_v63  ;;  %v5225_v35 = vld [vmem:[#allocation8 + $0xa0] ss:$8 sps:$4 sm:$0xff]  }
 0x249   :  { %3114 = vmatpush1.bf16.msra.mxu1 %v5154_v36  ;;  %4599 = vmatpush3.bf16.msra.mxu0 %v5161_v37  ;;  %v5230_v36 = vld [vmem:[#allocation8 + $0xb4] ss:$8 sps:$4 sm:$0xff]   ;;  %v5228_v37 = vld [vmem:[#allocation8 + $0xb0] ss:$8 sps:$4 sm:$0xff]  }
 0x24a   :  { %3115 = vmatprep.subr.bf16.mxu1 %v5160_v38  ;;  %4600 = vmatprep.subr.bf16.mxu0 %v5470_v63  ;;  %v5233_v38 = vld [vmem:[#allocation8 + $0xc4] ss:$8 sps:$4 sm:$0xff]  }
 0x24d   :  { %3116 = vmatpush1.bf16.msra.mxu1 %v5158_v39  ;;  %4601 = vmatpush3.bf16.msra.mxu0 %v5165_v40  ;;  %v5231_v39 = vld [vmem:[#allocation8 + $0xc0] ss:$8 sps:$4 sm:$0xff]   ;;  %v5236_v40 = vld [vmem:[#allocation8 + $0xd4] ss:$8 sps:$4 sm:$0xff]  }
 0x24e   :  { %3117 = vmatprep.subr.bf16.mxu1 %v5164_v41  ;;  %4602 = vmatprep.subr.bf16.mxu0 %v5470_v63  ;;  %v5234_v41 = vld [vmem:[#allocation8 + $0xd0] ss:$8 sps:$4 sm:$0xff]  }
 0x24f   :  { %v4492_v44 = vpop.f32.mrb[8].mxu0 }
 0x250   :  { %v4493_v48 = vpop.f32.mrb[9].mxu0 }
 0x251   :  { %v4494_v46 = vadd.f32 %v4493_v48, %v4492_v44  ;;  %3118 = vmatpush1.bf16.msra.mxu1 %v5162_v42  ;;  %4603 = vmatpush3.bf16.msra.mxu0 %v5169_v20  ;;  %v4495_v49 = vpop.f32.mrb[10].mxu0  ;;  %v5239_v42 = vld [vmem:[#allocation8 + $0xe4] ss:$8 sps:$4 sm:$0xff]   ;;  %v5237_v20 = vld [vmem:[#allocation8 + $0xe0] ss:$8 sps:$4 sm:$0xff]  }
 0x252   :  { %3119 = vmatprep.subr.bf16.mxu1 %v5168_v43  ;;  %4604 = vmatprep.subr.bf16.mxu0 %v5470_v63  ;;  %v4496_v51 = vpop.f32.mrb[11].mxu0  ;;  %v5242_v43 = vld [vmem:[#allocation8 + $0xf4] ss:$8 sps:$4 sm:$0xff]   ;;  %v5240_v44 = vld [vmem:[#allocation8 + $0xf0] ss:$8 sps:$4 sm:$0xff]  }
 0x253   :  { %v2176_v52 = vadd.f32 %v4494_v46, %v5683_v16  ;;  %v5206_v16 = vld [vmem:[#allocation8 + $0x34] ss:$8 sps:$4 sm:$0xff]   ;;  %v5245_v48 = vld [vmem:[#allocation8 + $0x104] ss:$8 sps:$4 sm:$0xff]  }
 0x254   :  { %v5267_v51 = vld [vmem:[#allocation10 + $0x40] sm:$0xff]  }
 0x255   :  { %v2216_v53 = vadd.f32 %v2215_v21, %v2176_v52  ;;  %3120 = vmatpush1.bf16.msra.mxu1 %v5166_v47  ;;  %4605 = vmatpush3.bf16.msra.mxu0 %v5173_v32  ;;  %v5207_v21 = vld [vmem:[#allocation8 + $0x40] ss:$8 sps:$4 sm:$0xff]  }
 0x256   :  { %3130 = vmatprep.subr.bf16.mxu1 %v5172_v50  ;;  %3597 = vmatprep.subr.bf16.mxu0 %v5197_v11  ;;  %v5268_v52 = vld [vmem:[#allocation10] sm:$0xff]  }
 0x257   :  { %v2225_v56 = vmax.f32 %v2216_v53, 0.0  ;;  %v5269_v53 = vld [vmem:[#allocation10 + $0x48] sm:$0xff]  }
 0x258   :  { %3122 = vmatmul.mubr.bf16.vlgmr.msra.gmra.mrb[12].mxu1 %v5685_v18  ;;  %v5204_v18 = vld [vmem:[#allocation8 + $0x30] ss:$8 sps:$4 sm:$0xff]  }
 0x259   :  { %v2230_v57 = vpack.c.bf16 %v2225_v56, %v2225_v56  ;;  %3131 = vmatpush1.bf16.msra.mxu1 %v5170_v54  ;;  %3162 = vmatprep.mubr.bf16.mxu1 %v5469_v25  ;;  %v5270_v54 = vld [vmem:[#allocation10 + $0x8] sm:$0xff]   ;;  %v5272_v56 = vld [vmem:[#allocation10 + $0x10] sm:$0xff]  }
 0x25a   :  { %3132 = vmatprep.subr.bf16.mxu1 %v5176_v55  ;;  %v5271_v55 = vld [vmem:[#allocation10 + $0x50] sm:$0xff]  }
 0x25b   :  { %4607 = vmatmul.mubr.bf16.vlgmr.msra.gmra.mrb[20].mxu0 %v2230_v57 }
 0x25c   :  { %3598 = vmatpush1.bf16.msra.mxu0 %v5195_v17 }
 0x25d   :  { %3133 = vmatpush1.bf16.msra.mxu1 %v5174_v58  ;;  %3599 = vmatprep.subr.bf16.mxu0 %v5200_v13  ;;  %v5274_v58 = vld [vmem:[#allocation10 + $0x18] sm:$0xff]  }
 0x25e   :  { %3134 = vmatprep.subr.bf16.mxu1 %v5179_v59  ;;  %v5275_v59 = vld [vmem:[#allocation10 + $0x60] sm:$0xff]  }
 0x260   :  { %3600 = vmatpush1.bf16.msra.mxu0 %v5198_v14 }
 0x261   :  { %3135 = vmatpush1.bf16.msra.mxu1 %v5177_v60  ;;  %3601 = vmatprep.subr.bf16.mxu0 %v5203_v3  ;;  %v5276_v60 = vld [vmem:[#allocation10 + $0x20] sm:$0xff]  }
 0x262   :  { %3136 = vmatprep.subr.bf16.mxu1 %v5182_v61  ;;  %v5277_v61 = vld [vmem:[#allocation10 + $0x68] sm:$0xff]  }
 0x264   :  { %3602 = vmatpush1.bf16.msra.mxu0 %v5201_v15 }
 0x265   :  { %3137 = vmatpush1.bf16.msra.mxu1 %v5180_v62  ;;  %3603 = vmatprep.subr.bf16.mxu0 %v5206_v16  ;;  %v2391_v62 = vld [vmem:[%s5746_s4] sm:$0x7] }
 0x266   :  { %3138 = vmatprep.subr.bf16.mxu1 %v5185_v0  ;;  %v5278_v0 = vld [vmem:[#allocation10 + $0x28] sm:$0xff]   ;;  %v2396_v16 = vrot.slane %v2391_v62, %v5658_v2 }
 0x268   :  { %3604 = vmatpush1.bf16.msra.mxu0 %v5204_v18  ;;  %v2400_v18 = vrot.slane %v2391_v62, %v5666_v4 }
 0x269   :  { %3139 = vmatpush1.bf16.msra.mxu1 %v5183_v6  ;;  %3605 = vmatprep.subr.bf16.mxu0 %v5209_v19  ;;  %v2404_v6 = vrot.slane %v2391_v62, %v440_v45 }
 0x26a   :  { %3140 = vmatprep.subr.bf16.mxu1 %v5188_v5 }
 0x26c   :  { %3606 = vmatpush1.bf16.msra.mxu0 %v5207_v21 }
 0x26d   :  { %3141 = vmatpush1.bf16.msra.mxu1 %v5186_v7  ;;  %3607 = vmatprep.subr.bf16.mxu0 %v5212_v22 }
 0x26e   :  { %3142 = vmatprep.subr.bf16.mxu1 %v5191_v8 }
 0x270   :  { %3608 = vmatpush1.bf16.msra.mxu0 %v5210_v23 }
 0x271   :  { %3143 = vmatpush1.bf16.msra.mxu1 %v5189_v12  ;;  %3609 = vmatprep.subr.bf16.mxu0 %v5215_v24 }
 0x272   :  { %3144 = vmatprep.subr.bf16.mxu1 %v5194_v9 }
 0x274   :  { %3610 = vmatpush1.bf16.msra.mxu0 %v5213_v26 }
 0x275   :  { %3145 = vmatpush1.bf16.msra.mxu1 %v5192_v10  ;;  %3611 = vmatprep.subr.bf16.mxu0 %v5218_v27 }
 0x276   :  { %4553 = vmatprep.subr.bf16.mxu1 %v5267_v51 }
 0x278   :  { %3163 = vmatmul.mubr.bf16.vlgmr.msra.gmra.mrb[12].mxu1 %v2230_v57  ;;  %3612 = vmatpush1.bf16.msra.mxu0 %v5216_v28  ;;  %v5273_v57 = vld [vmem:[#allocation10 + $0x58] sm:$0xff]   ;;  %v5243_v28 = vld [vmem:[#allocation8 + $0x100] ss:$8 sps:$4 sm:$0xff]  }
 0x279   :  { %3613 = vmatprep.subr.bf16.mxu0 %v5221_v29  ;;  %4554 = vmatpush3.bf16.msra.mxu1 %v5268_v52 }
 0x27a   :  { %4555 = vmatprep.subr.bf16.mxu1 %v5269_v53 }
 0x27c   :  { %3614 = vmatpush1.bf16.msra.mxu0 %v5219_v30  ;;  %v5248_v30 = vld [vmem:[#allocation8 + $0x114] ss:$8 sps:$4 sm:$0xff]  }
 0x27d   :  { %3615 = vmatprep.subr.bf16.mxu0 %v5224_v31  ;;  %4556 = vmatpush3.bf16.msra.mxu1 %v5270_v54  ;;  %v5246_v31 = vld [vmem:[#allocation8 + $0x110] ss:$8 sps:$4 sm:$0xff]  }
 0x27e   :  { %4557 = vmatprep.subr.bf16.mxu1 %v5271_v55 }
 0x280   :  { %3616 = vmatpush1.bf16.msra.mxu0 %v5222_v33  ;;  %v5251_v33 = vld [vmem:[#allocation8 + $0x124] ss:$8 sps:$4 sm:$0xff]  }
 0x281   :  { %3617 = vmatprep.subr.bf16.mxu0 %v5227_v34  ;;  %4558 = vmatpush3.bf16.msra.mxu1 %v5272_v56  ;;  %v5249_v34 = vld [vmem:[#allocation8 + $0x120] ss:$8 sps:$4 sm:$0xff]  }
 0x282   :  { %4559 = vmatprep.subr.bf16.mxu1 %v5273_v57 }
 0x284   :  { %3618 = vmatpush1.bf16.msra.mxu0 %v5225_v35  ;;  %v5254_v35 = vld [vmem:[#allocation8 + $0x134] ss:$8 sps:$4 sm:$0xff]  }
 0x285   :  { %3619 = vmatprep.subr.bf16.mxu0 %v5230_v36  ;;  %4560 = vmatpush3.bf16.msra.mxu1 %v5274_v58  ;;  %v5252_v36 = vld [vmem:[#allocation8 + $0x130] ss:$8 sps:$4 sm:$0xff]  }
 0x286   :  { %4561 = vmatprep.subr.bf16.mxu1 %v5275_v59 }
 0x288   :  { %3620 = vmatpush1.bf16.msra.mxu0 %v5228_v37  ;;  %v5257_v37 = vld [vmem:[#allocation8 + $0x144] ss:$8 sps:$4 sm:$0xff]  }
 0x289   :  { %3621 = vmatprep.subr.bf16.mxu0 %v5233_v38  ;;  %4562 = vmatpush3.bf16.msra.mxu1 %v5276_v60  ;;  %v5255_v38 = vld [vmem:[#allocation8 + $0x140] ss:$8 sps:$4 sm:$0xff]  }
 0x28a   :  { %4563 = vmatprep.subr.bf16.mxu1 %v5277_v61  ;;  %v5283_v61 = vld [vmem:[#allocation11] sm:$0xff]  }
 0x28c   :  { %3622 = vmatpush1.bf16.msra.mxu0 %v5231_v39  ;;  %v5260_v39 = vld [vmem:[#allocation8 + $0x154] ss:$8 sps:$4 sm:$0xff]  }
 0x28d   :  { %3623 = vmatprep.subr.bf16.mxu0 %v5236_v40  ;;  %4564 = vmatpush3.bf16.msra.mxu1 %v5278_v0  ;;  %v5258_v40 = vld [vmem:[#allocation8 + $0x150] ss:$8 sps:$4 sm:$0xff]   ;;  %v5284_v0 = vld [vmem:[#allocation11 + $0x8] sm:$0xff]  }
 0x290   :  { %3624 = vmatpush1.bf16.msra.mxu0 %v5234_v41  ;;  %v5263_v41 = vld [vmem:[#allocation8 + $0x164] ss:$8 sps:$4 sm:$0xff]  }
 0x291   :  { %3625 = vmatprep.subr.bf16.mxu0 %v5239_v42  ;;  %v5266_v42 = vld [vmem:[#allocation8 + $0x174] ss:$8 sps:$4 sm:$0xff]  }
 0x294   :  { %3626 = vmatpush1.bf16.msra.mxu0 %v5237_v20  ;;  %v5264_v20 = vld [vmem:[#allocation8 + $0x170] ss:$8 sps:$4 sm:$0xff]  }
 0x295   :  { %3627 = vmatprep.subr.bf16.mxu0 %v5242_v43 }
 0x298   :  { %3628 = vmatpush1.bf16.msra.mxu0 %v5240_v44 }
 0x299   :  { %3638 = vmatprep.subr.bf16.mxu0 %v5245_v48  ;;  %v5279_v48 = vld [vmem:[#allocation10 + $0x70] sm:$0xff]  }
 0x29a   :  { %4565 = vmatprep.subr.bf16.mxu1 %v5279_v48 }
 0x2eb   :  { %v4516_v46 = vpop.f32.mrb[12].mxu0 }
 0x2ec   :  { %v4517_v47 = vpop.f32.mrb[13].mxu0 }
 0x2ed   :  { %v4518_v32 = vadd.f32 %v4517_v47, %v4516_v46  ;;  %v4519_v49 = vpop.f32.mrb[14].mxu0  ;;  %v5280_v46 = vld [vmem:[#allocation10 + $0x30] sm:$0xff]   ;;  %v5281_v47 = vld [vmem:[#allocation10 + $0x78] sm:$0xff]  }
 0x2ee   :  { %v4520_v50 = vpop.f32.mrb[15].mxu0  ;;  %4566 = vmatpush3.bf16.msra.mxu1 %v5280_v46  ;;  %v3345_v49 = vld [vmem:[%s5748_s6] sm:$0x3] }
 0x2ef   :  { %v3206_v8 = vadd.f32 %v4518_v32, %v2404_v6  ;;  %v5282_v32 = vld [vmem:[#allocation10 + $0x38] sm:$0xff]   ;;  %4567 = vmatprep.subr.bf16.mxu1 %v5281_v47  ;;  %v3350_v50 = vrot.slane %v3345_v49, %v5658_v2  ;;  %v3354_v51 = vrot.slane %v3345_v49, %v5666_v4  ;;  %v5285_v2 = vld [vmem:[#allocation11 + $0x10] sm:$0xff]   ;;  %v5287_v6 = vld [vmem:[#allocation11 + $0x20] sm:$0xff]  }
 0x2f0   :  { %v5286_v4 = vld [vmem:[#allocation11 + $0x18] sm:$0xff]  }
 0x2f2   :  { %4568 = vmatpush3.bf16.msra.mxu1 %v5282_v32 }
 0x2f3   :  { %4610 = vmatprep.subr.bf16.mxu1 %v5470_v63 }
 0x30b   :  { %v4538_v5 = vpop.f32.mrb[16].mxu0 }
 0x30c   :  { %v4539_v7 = vpop.f32.mrb[17].mxu0 }
 0x30d   :  { %v4540_v12 = vadd.f32 %v4539_v7, %v4538_v5  ;;  %v4541_v9 = vpop.f32.mrb[18].mxu0  ;;  %v5288_v5 = vld [vmem:[#allocation11 + $0x28] sm:$0xff]   ;;  %v5289_v7 = vld [vmem:[#allocation11 + $0x30] sm:$0xff]  }
 0x30e   :  { %v4542_v10 = vpop.f32.mrb[19].mxu0  ;;  %v4406_v9 = vld [vmem:[%s5750_s8] ss:$0 sm:$0xff]  ;;  %s5423_s8 = scalar_lea.vmem %s3979_s20, 128 }
 0x30f   :  { %v3246_v17 = vadd.f32 %v4540_v12, %v3206_v8  ;;  %v5290_v8 = vld [vmem:[#allocation11 + $0x38] sm:$0xff]   ;;  %p5424_p6 = scmp.ne.s32.totalorder %s3979_s20, %s5423_s8  ;;  %p5429_p8 = scmp.lt.s32.totalorder %s5423_s8, %s5423_s8 }
 0x311   :  { %p5430_p9 = por %p5429_p8, %p5428_p7 }
 0x313   :  { %p5431_p10 = pnand %p5430_p9, %p5424_p6 }
 0x32e   :  { %v3285_v11 = vpop.f32.mrb[20].mxu0 }
 0x32f   :  { %v3286_v13 = vadd.f32 %v3285_v11, %v3246_v17  ;;  %v4608_v14 = vpop.f32.mrb[21].mxu0 }
 0x330   :  { %v3288_v3 = vpop.f32.mrb[22].mxu0 }
 0x331   :  { %v4609_v15 = vpop.f32.mrb[23].mxu0  ;;  %v3293_v43 = vmax.f32 %v3286_v13, 0.0 }
 0x333   :  { %v3296_v44 = vpack.c.bf16 %v3293_v43, %v3293_v43 }
 0x34b   :  { %v3164_v19 = vpop.f32.mrb[12].mxu1 }
 0x34c   :  { %v4634_v1 = vadd.f32 %v3164_v19, %v2396_v16  ;;  %v3166_v45 = vpop.f32.mrb[13].mxu1  ;;  %v4423_v16 = vld [vmem:[%s5752_s10] ss:$0 sm:$0xff] }
 0x34d   :  { %v4635_v21 = vadd.f32 %v3166_v45, %v2400_v18  ;;  %v3168_v22 = vpop.f32.mrb[14].mxu1 }
 0x34e   :  { %v3291_v23 = vmax.f32 %v4634_v1, 0.0  ;;  %v3169_v24 = vpop.f32.mrb[15].mxu1 }
 0x34f   :  { %v3292_v26 = vmax.f32 %v4635_v21, 0.0 }
 0x350   :  { %v3294_v29 = vpack.c.bf16 %v3291_v23, %v3291_v23 }
 0x351   :  { %v3295_v27 = vpack.c.bf16 %v3292_v26, %v3292_v26 }
 0x353   :  { %3629 = vmatprep.mubr.bf16.mxu0 %v3295_v27 }
 0x354   :  { %3630 = vmatmul.mubr.bf16.vlgmr.msra.gmra.mrb[24].mxu0 %v3294_v29 }
 0x355   :  { %3639 = vmatpush1.bf16.msra.mxu0 %v5243_v28  ;;  %3670 = vmatprep.mubr.bf16.mxu0 %v5469_v25  ;;  %v5261_v25 = vld [vmem:[#allocation8 + $0x160] ss:$8 sps:$4 sm:$0xff]  }
 0x356   :  { %3640 = vmatprep.subr.bf16.mxu0 %v5248_v30 }
 0x359   :  { %3641 = vmatpush1.bf16.msra.mxu0 %v5246_v31 }
 0x35a   :  { %3642 = vmatprep.subr.bf16.mxu0 %v5251_v33 }
 0x35d   :  { %3643 = vmatpush1.bf16.msra.mxu0 %v5249_v34 }
 0x35e   :  { %3644 = vmatprep.subr.bf16.mxu0 %v5254_v35 }
 0x361   :  { %3645 = vmatpush1.bf16.msra.mxu0 %v5252_v36 }
 0x362   :  { %3646 = vmatprep.subr.bf16.mxu0 %v5257_v37 }
 0x365   :  { %3647 = vmatpush1.bf16.msra.mxu0 %v5255_v38 }
 0x366   :  { %3648 = vmatprep.subr.bf16.mxu0 %v5260_v39 }
 0x369   :  { %3649 = vmatpush1.bf16.msra.mxu0 %v5258_v40 }
 0x36a   :  { %3650 = vmatprep.subr.bf16.mxu0 %v5263_v41 }
 0x36d   :  { %3651 = vmatpush1.bf16.msra.mxu0 %v5261_v25 }
 0x36e   :  { %3652 = vmatprep.subr.bf16.mxu0 %v5266_v42 }
 0x371   :  { %3653 = vmatpush1.bf16.msra.mxu0 %v5264_v20 }
 0x374   :  { %3671 = vmatmul.mubr.bf16.vlgmr.msra.gmra.mrb[24].mxu0 %v3296_v44 }
 0x447   :  { %v3672_v52 = vpop.f32.mrb[24].mxu0 }
 0x448   :  { %v4636_v53 = vadd.f32 %v3672_v52, %v3350_v50  ;;  %v3674_v54 = vpop.f32.mrb[25].mxu0 }
 0x449   :  { %v4637_v55 = vadd.f32 %v3674_v54, %v3354_v51  ;;  %v3676_v56 = vpop.f32.mrb[26].mxu0 }
 0x44a   :  { %v3679_v57 = vmax.f32 %v4636_v53, 0.0  ;;  %v3677_v58 = vpop.f32.mrb[27].mxu0 }
 0x44b   :  { %v3680_v59 = vmax.f32 %v4637_v55, 0.0 }
 0x44c   :  { %v3681_v62 = vpack.c.bf16 %v3679_v57, %v3679_v57 }
 0x44d   :  { %v3682_v60 = vpack.c.bf16 %v3680_v59, %v3680_v59 }
 0x44f   :  { %3850 = vmatprep.mubr.bf16.mxu1 %v3682_v60 }
 0x450   :  { %3851 = vmatmul.mubr.bf16.vlgmr.msra.gmra.mrb[16].mxu1 %v3681_v62 }
 0x451   :  { %4611 = vmatpush3.bf16.msra.mxu1 %v5283_v61  ;;  %4626 = vmatprep.mubr.msk.bf16.mxu1 %vm5471_vm1, %v5470_v63 }
 0x452   :  { %4612 = vmatprep.subr.bf16.mxu1 %v5470_v63 }
 0x455   :  { %4613 = vmatpush3.bf16.msra.mxu1 %v5284_v0 }
 0x456   :  { %4614 = vmatprep.subr.bf16.mxu1 %v5470_v63 }
 0x459   :  { %4615 = vmatpush3.bf16.msra.mxu1 %v5285_v2 }
 0x45a   :  { %4616 = vmatprep.subr.bf16.mxu1 %v5470_v63 }
 0x45d   :  { %4617 = vmatpush3.bf16.msra.mxu1 %v5286_v4 }
 0x45e   :  { %4618 = vmatprep.subr.bf16.mxu1 %v5470_v63 }
 0x461   :  { %4619 = vmatpush3.bf16.msra.mxu1 %v5287_v6 }
 0x462   :  { %4620 = vmatprep.subr.bf16.mxu1 %v5470_v63 }
 0x465   :  { %4621 = vmatpush3.bf16.msra.mxu1 %v5288_v5 }
 0x466   :  { %4622 = vmatprep.subr.bf16.mxu1 %v5470_v63 }
 0x469   :  { %4623 = vmatpush3.bf16.msra.mxu1 %v5289_v7 }
 0x46a   :  { %4624 = vmatprep.subr.bf16.mxu1 %v5470_v63 }
 0x46d   :  { %4625 = vmatpush3.bf16.msra.mxu1 %v5290_v8 }
 0x523   :  { %v4569_v12 = vpop.f32.mrb[16].mxu1 }
 0x524   :  { %v4570_v10 = vpop.f32.mrb[17].mxu1 }
 0x525   :  { %v4571_v17 = vadd.f32 %v4570_v10, %v4569_v12  ;;  %v4572_v11 = vpop.f32.mrb[18].mxu1 }
 0x526   :  { %v4573_v13 = vpop.f32.mrb[19].mxu1 }
 0x527   :  { %v3853_v14 = vadd.f32 %v4571_v17, %v4406_v9 }
 0x529   :  { %v3858_v3 = vmax.f32 %v3853_v14, 0.0 }
 0x52b   :  { %v3859_v15 = vpack.c.bf16 %v3858_v3, %v3858_v3 }
 0x52d   :  { %4627 = vmatmul.mubr.bf16.vlgmr.msra.gmra.mrb[20].mxu1 %v3859_v15 }
 0x600   :  { %v3965_v63 = vpop.f32.mrb[20].mxu1 }
 0x601   :  { %v3966_v18 = vadd.f32 %v4423_v16, %v3965_v63  ;;  %v4628_v19 = vpop.f32.mrb[21].mxu1 }
 0x602   :  { %v3968_v1 = vpop.f32.mrb[22].mxu1 }
 0x603   :  { %3971 = vst [vmem:[#allocation13] sm:$0xff] %v3966_v18  ;;  %v4629_v45 = vpop.f32.mrb[23].mxu1 }
 0x604   :  { %5434 = shalt.err (!%p5431_p10)
}
 0x605   :  { %s5435_s10 = scalar_lea.hbm %s5753_s11, 128 }
 0x606   :  { %p5436_p11 = scmp.ne.s32.totalorder %s5753_s11, %s5435_s10  ;;  %p5439_p12 = scmp.lt.u32.totalorder %s5435_s10, %s5753_s11 }
 0x608   :  { %p5441_p13 = pnand %p5439_p12, %p5436_p11 }
 0x60a   :  { %5444 = shalt.err (!%p5441_p13)
}
 0x60b   :  { %3981 = dma.vmem_to_hbm [thread:$0]  %s3979_s20, 128, %s5753_s11, [#allocation4]  }
 0x60c   :  { %5453 = dma.done.wait [#allocation4], 128  }
 0x60d   :  { %5454 = vsyncadd [#allocation4], 4294967168 }
 0x60e   :  { %3985 = vsyncpa [#allocation3], 1 }
 0x60f   :  { %3986 = vsyncpa [#allocation6], 1 }
 0x610   :  { %3987 = vsyncpa [#allocation9], 1 }
 0x611   :  { %3988 = vsyncpa [#allocation12], 1 }
 0x612   :  { %3989 = vsyncpa [#allocation4], 1 }

</bundles_post_ra>
